<compile_context>
chip_gen: v7x
topology: tpu7x:2x2x1
jax: 0.10.0
libtpu: 0.0.40
codegen_flags: <defaults>
</compile_context>

<pallas_src>
import functools
import math

import jax
import jax.numpy as jnp
from jax import lax
from jax.experimental import pallas as pl
from jax.experimental.pallas import tpu as pltpu


_VMEM_LIMIT = 64 * 1024 * 1024


# ----------------------------------------------------------------------------
# In-kernel elementwise helpers (kept in f32; transcendentals hit the EUP slot)
# ----------------------------------------------------------------------------
def _gelu_tanh(x):
    # tanh-approx GELU (PyTorch's exact nn.GELU is erf-based; difference is
    # ~1e-3 max and acceptable for inference — chosen for the EUP tanh path).
    c = 0.7978845608028654  # sqrt(2/pi)
    return 0.5 * x * (1.0 + jnp.tanh(c * (x + 0.044715 * x * x * x)))


def _layernorm(x, gamma, beta, eps=1e-5):
    mu = jnp.mean(x, axis=-1, keepdims=True)
    var = jnp.mean((x - mu) ** 2, axis=-1, keepdims=True)
    return (x - mu) * lax.rsqrt(var + eps) * gamma + beta


def _row_tile(m, max_tile=512):
    """Row-tile size: big enough to pipeline, >=2 grid steps when feasible."""
    tm = min(max_tile, m)
    if m >= 16 and pl.cdiv(m, tm) < 2:
        tm = min(tm, (((m + 1) // 2) + 7) // 8 * 8)
    return tm


# ----------------------------------------------------------------------------
# Kernel 1: row-tiled linear (patch-embedding conv expressed as matmul)
# ----------------------------------------------------------------------------
def _linear_kernel(x_ref, w_ref, b_ref, o_ref):
    o_ref[...] = (jnp.dot(x_ref[...], w_ref[...],
                          preferred_element_type=jnp.float32) + b_ref[...])


def pallas_linear(x_bf16, w_bf16, b):
    M, K = x_bf16.shape
    N = w_bf16.shape[1]
    tm = _row_tile(M)
    return pl.pallas_call(
        _linear_kernel,
        out_shape=jax.ShapeDtypeStruct((M, N), jnp.float32),
        grid=(pl.cdiv(M, tm),),
        in_specs=[
            pl.BlockSpec((tm, K), lambda i: (i, 0)),   # row tile of patches (bf16)
            pl.BlockSpec((K, N), lambda i: (0, 0)),    # weight (bf16), constant
            pl.BlockSpec((1, N), lambda i: (0, 0)),    # bias (f32)
        ],
        out_specs=pl.BlockSpec((tm, N), lambda i: (i, 0)),
        compiler_params=pltpu.CompilerParams(
            dimension_semantics=("parallel",),
            vmem_limit_bytes=_VMEM_LIMIT),
    )(x_bf16, w_bf16, b)


# ----------------------------------------------------------------------------
# Kernel 2: one full transformer encoder block (pre-LN ViT block)
#   x = x + MHA(LN1(x)) ;  x = x + MLP(LN2(x))   (MLP = Linear->GELU->Linear)
# Heads are batched: one dot_general for all logits, one softmax chain, one
# batched context matmul and one batched (head-split) out-projection.
# ----------------------------------------------------------------------------
def _encoder_kernel(
    x_ref, ln1g, ln1b, wqkv, bqkv, wout, bout, ln2g, ln2b, w1, b1, w2, b2,
    o_ref, *, num_heads,
):
    S, D = x_ref.shape[1], x_ref.shape[2]
    Dh = D // num_heads
    scale = 1.0 / math.sqrt(Dh)
    bf16 = jnp.bfloat16

    x = x_ref[0]  # (S, D), residual stream kept in f32

    # ---- multi-head self attention (pre-norm) ----
    h = _layernorm(x, ln1g[...], ln1b[...])
    qkv = (jnp.dot(h.astype(bf16), wqkv[...], preferred_element_type=jnp.float32)
           + bqkv[...])                                            # (S, 3D) f32

    def split_heads(lo):
        # (S, H*Dh) lane-region -> (H, S, Dh): one batched operand for the MXU.
        return jnp.stack(
            [qkv[:, lo + hd * Dh: lo + (hd + 1) * Dh] for hd in range(num_heads)],
            axis=0)

    q = (split_heads(0) * scale).astype(bf16)        # (H, S, Dh)
    k = split_heads(D).astype(bf16)                  # (H, S, Dh)
    v = split_heads(2 * D).astype(bf16)              # (H, S, Dh)

    # batched logits over all heads: (H, S, S)
    logits = lax.dot_general(q, k, (((2,), (2,)), ((0,), (0,))),
                             preferred_element_type=jnp.float32)
    logits = logits - jnp.max(logits, axis=-1, keepdims=True)
    p = jnp.exp(logits)
    probs = p * pl.reciprocal(jnp.sum(p, axis=-1, keepdims=True), approx=True)

    # batched context: (H, S, Dh)
    ctx = lax.dot_general(probs.astype(bf16), v, (((2,), (1,)), ((0,), (0,))),
                          preferred_element_type=jnp.float32)

    # out-projection with head-split weight (H, Dh, D); sum over heads
    # (== concat-heads @ W_out, reassociated).
    attn_h = lax.dot_general(ctx.astype(bf16), wout[...],
                             (((2,), (1,)), ((0,), (0,))),
                             preferred_element_type=jnp.float32)   # (H, S, D)
    x = x + jnp.sum(attn_h, axis=0) + bout[...]

    # ---- MLP (pre-norm) ----
    h2 = _layernorm(x, ln2g[...], ln2b[...])
    m = (jnp.dot(h2.astype(bf16), w1[...], preferred_element_type=jnp.float32)
         + b1[...])
    m = _gelu_tanh(m)
    m = (jnp.dot(m.astype(bf16), w2[...], preferred_element_type=jnp.float32)
         + b2[...])
    x = x + m

    o_ref[0] = x


def encoder_block(x, p, num_heads):
    B, S, D = x.shape
    M = p["w1"].shape[1]
    Dh = D // num_heads
    kernel = functools.partial(_encoder_kernel, num_heads=num_heads)
    in_specs = [
        pl.BlockSpec((1, S, D), lambda b: (b, 0, 0)),            # x
        pl.BlockSpec((1, D), lambda b: (0, 0)),                  # ln1 gamma
        pl.BlockSpec((1, D), lambda b: (0, 0)),                  # ln1 beta
        pl.BlockSpec((D, 3 * D), lambda b: (0, 0)),              # qkv weight bf16
        pl.BlockSpec((1, 3 * D), lambda b: (0, 0)),              # qkv bias f32
        pl.BlockSpec((num_heads, Dh, D), lambda b: (0, 0, 0)),   # out-proj weight bf16 (head-split)
        pl.BlockSpec((1, D), lambda b: (0, 0)),                  # out-proj bias
        pl.BlockSpec((1, D), lambda b: (0, 0)),                  # ln2 gamma
        pl.BlockSpec((1, D), lambda b: (0, 0)),                  # ln2 beta
        pl.BlockSpec((D, M), lambda b: (0, 0)),                  # mlp fc1 weight bf16
        pl.BlockSpec((1, M), lambda b: (0, 0)),                  # mlp fc1 bias
        pl.BlockSpec((M, D), lambda b: (0, 0)),                  # mlp fc2 weight bf16
        pl.BlockSpec((1, D), lambda b: (0, 0)),                  # mlp fc2 bias
    ]
    return pl.pallas_call(
        kernel,
        out_shape=jax.ShapeDtypeStruct((B, S, D), jnp.float32),
        grid=(B,),
        in_specs=in_specs,
        out_specs=pl.BlockSpec((1, S, D), lambda b: (b, 0, 0)),
        compiler_params=pltpu.CompilerParams(
            dimension_semantics=("parallel",),
            vmem_limit_bytes=_VMEM_LIMIT),
    )(
        x, p["ln1_g"], p["ln1_b"], p["w_qkv"], p["b_qkv"], p["w_out_h"], p["b_out"],
        p["ln2_g"], p["ln2_b"], p["w1"], p["b1"], p["w2"], p["b2"],
    )


# ----------------------------------------------------------------------------
# Kernel 3: classifier head = LayerNorm + Linear on the class token
# (output lane-padded to a multiple of 128 classes for unmasked stores)
# ----------------------------------------------------------------------------
def _classifier_kernel(x_ref, g_ref, b_ref, w_ref, bias_ref, o_ref):
    h = _layernorm(x_ref[...], g_ref[...], b_ref[...])
    o_ref[...] = (jnp.dot(h.astype(jnp.bfloat16), w_ref[...],
                          preferred_element_type=jnp.float32) + bias_ref[...])


def pallas_classifier(x, g, b, w_pad_bf16, bias_pad):
    Bn, D = x.shape
    Np = w_pad_bf16.shape[1]
    return pl.pallas_call(
        _classifier_kernel,
        out_shape=jax.ShapeDtypeStruct((Bn, Np), jnp.float32),
        grid=(1,),
        in_specs=[
            pl.BlockSpec((Bn, D), lambda i: (0, 0)),
            pl.BlockSpec((1, D), lambda i: (0, 0)),
            pl.BlockSpec((1, D), lambda i: (0, 0)),
            pl.BlockSpec((D, Np), lambda i: (0, 0)),
            pl.BlockSpec((1, Np), lambda i: (0, 0)),
        ],
        out_specs=pl.BlockSpec((Bn, Np), lambda i: (0, 0)),
        compiler_params=pltpu.CompilerParams(
            vmem_limit_bytes=_VMEM_LIMIT),
    )(x, g, b, w_pad_bf16, bias_pad)


# ----------------------------------------------------------------------------
# One-time parameter preparation (bf16 casts, head-split, lane-padding).
# Done ONCE, outside the jitted forward, so no per-call weight re-casting.
# ----------------------------------------------------------------------------
def prepare_params(params, *, num_heads):
    bf16 = jnp.bfloat16
    D = params["patch_w"].shape[1]
    Dh = D // num_heads
    Nc = params["head_w"].shape[1]
    Np = ((Nc + 127) // 128) * 128

    layers = []
    for lp in params["layers"]:
        layers.append({
            "ln1_g": lp["ln1_g"], "ln1_b": lp["ln1_b"],
            "w_qkv": lp["w_qkv"].astype(bf16),
            "b_qkv": lp["b_qkv"],
            "w_out_h": lp["w_out"].reshape(num_heads, Dh, D).astype(bf16),
            "b_out": lp["b_out"],
            "ln2_g": lp["ln2_g"], "ln2_b": lp["ln2_b"],
            "w1": lp["w1"].astype(bf16), "b1": lp["b1"],
            "w2": lp["w2"].astype(bf16), "b2": lp["b2"],
        })

    return {
        "patch_w": params["patch_w"].astype(bf16),
        "patch_b": params["patch_b"].reshape(1, D),
        "cls_token": params["cls_token"],
        "pos_emb": params["pos_emb"],
        "cls_ln_g": params["cls_ln_g"].reshape(1, D),
        "cls_ln_b": params["cls_ln_b"].reshape(1, D),
        "head_w_pad": jnp.pad(params["head_w"],
                              ((0, 0), (0, Np - Nc))).astype(bf16),
        "head_b_pad": jnp.pad(params["head_b"], (0, Np - Nc)).reshape(1, Np),
        "layers": layers,
    }


# ----------------------------------------------------------------------------
# Full ViT forward (jitted; patch/head/class config is static)
# ----------------------------------------------------------------------------
@functools.partial(jax.jit, static_argnames=("patch_size", "num_heads",
                                             "num_classes"))
def vit_forward(x, prep, *, patch_size, num_heads, num_classes):
    B, C, H, W = x.shape
    P = patch_size
    D = prep["patch_w"].shape[1]
    nH, nW = H // P, W // P
    N = nH * nW

    # Patch embedding: Conv2d(k=P, stride=P) == im2col (non-overlapping) + matmul.
    # Flatten each patch in (c, ph, pw) order to match Conv2d weight layout.
    patches = (
        x.reshape(B, C, nH, P, nW, P)
        .transpose(0, 2, 4, 1, 3, 5)
        .reshape(B * N, C * P * P)
        .astype(jnp.bfloat16)                       # halve DMA bytes into matmul
    )
    emb = pallas_linear(patches, prep["patch_w"], prep["patch_b"]).reshape(B, N, D)

    # cls token + position embedding (glue).  embedding_dropout: identity (eval).
    cls = jnp.broadcast_to(prep["cls_token"], (B, 1, D))
    seq = jnp.concatenate([cls, emb], axis=1) + prep["pos_emb"]

    # Transformer encoder stack (one fused Pallas kernel call per block).
    for lp in prep["layers"]:
        seq = encoder_block(seq, lp, num_heads)

    # Classifier on the class token (lane-padded output, sliced back to Nc).
    cls_out = seq[:, 0, :]
    logits_pad = pallas_classifier(cls_out, prep["cls_ln_g"], prep["cls_ln_b"],
                                   prep["head_w_pad"], prep["head_b_pad"])
    return logits_pad[:, :num_classes]


# ----------------------------------------------------------------------------
# Deterministic parameter initialization (synthetic weights, no checkpoint)
# ----------------------------------------------------------------------------
def init_params(key, *, C, P, D, M, layers, ncls, n_patches):
    keys = iter(jax.random.split(key, 16 + 16 * layers))

    def nrm(shape, std=0.02):
        return (std * jax.random.normal(next(keys), shape)).astype(jnp.float32)

    params = {
        "patch_w": nrm((C * P * P, D)),   # Conv2d weight, flattened & transposed
        "patch_b": nrm((D,)),
        "cls_token": nrm((1, 1, D), std=1.0),
        "pos_emb": nrm((1, n_patches + 1, D), std=1.0),
        "cls_ln_g": jnp.ones((D,), jnp.float32),
        "cls_ln_b": jnp.zeros((D,), jnp.float32),
        "head_w": nrm((D, ncls)),
        "head_b": nrm((ncls,)),
        "layers": [],
    }
    for _ in range(layers):
        params["layers"].append({
            "ln1_g": jnp.ones((1, D), jnp.float32),
            "ln1_b": jnp.zeros((1, D), jnp.float32),
            "w_qkv": nrm((D, 3 * D)),
            "b_qkv": nrm((1, 3 * D)),
            "w_out": nrm((D, D)),
            "b_out": nrm((1, D)),
            "ln2_g": jnp.ones((1, D), jnp.float32),
            "ln2_b": jnp.zeros((1, D), jnp.float32),
            "w1": nrm((D, M)),
            "b1": nrm((1, M)),
            "w2": nrm((M, D)),
            "b2": nrm((1, D)),
        })
    return params


if __name__ == "__main__":
    # Small ViT configuration consistent with the module's forward:
    #   image_size=16, in_channels=4, patch_size=4  -> 16 patches, seq len 17
    #   embedding_dim=32, num_heads=4, mlp_size=64, 2 layers, 10 classes
    B, C, IMG, PATCH = 2, 4, 16, 4
    EMBED, MLP, HEADS, LAYERS, NCLS = 32, 64, 4, 2, 10
    N_PATCHES = (IMG // PATCH) ** 2

    key = jax.random.PRNGKey(0)
    kx, kp = jax.random.split(key)
    x = jax.random.normal(kx, (B, C, IMG, IMG), jnp.float32)
    params = init_params(
        kp, C=C, P=PATCH, D=EMBED, M=MLP, layers=LAYERS, ncls=NCLS,
        n_patches=N_PATCHES,
    )
    prep = prepare_params(params, num_heads=HEADS)

    logits = vit_forward(x, prep, patch_size=PATCH, num_heads=HEADS,
                         num_classes=NCLS)
    logits = jax.block_until_ready(logits)
    assert logits.shape == (B, NCLS), logits.shape
    assert jnp.all(jnp.isfinite(logits))
    print("KERNEL_OK")
</pallas_src>

<mosaic_0001>
module attributes {stable_mosaic.version = 11 : i64} {
  func.func @_linear_kernel(%arg0: i32, %arg1: memref<16x64xbf16, #tpu.memory_space<vmem>>, %arg2: memref<64x32xbf16, #tpu.memory_space<vmem>>, %arg3: memref<1x32xf32, #tpu.memory_space<vmem>>, %arg4: memref<16x32xf32, #tpu.memory_space<vmem>>) attributes {dimension_semantics = [#tpu.dimension_semantics<parallel>], iteration_bounds = array<i64: 2>, scalar_prefetch = 0 : i64, scratch_operands = 0 : i64, tpu.core_type = #tpu.core_type<tc>, window_params = [{transform_indices = @transform_0, window_bounds = array<i64: 16, 64>}, {pipeline_mode = #tpu.pipeline_mode<synchronous>, transform_indices = @transform_1, window_bounds = array<i64: 64, 32>}, {pipeline_mode = #tpu.pipeline_mode<synchronous>, transform_indices = @transform_2, window_bounds = array<i64: 1, 32>}, {transform_indices = @transform_3, window_bounds = array<i64: 16, 32>}]} {
    %c0 = arith.constant 0 : index
    %c0_0 = arith.constant 0 : index
    %0 = vector.load %arg1[%c0, %c0_0] : memref<16x64xbf16, #tpu.memory_space<vmem>>, vector<16x64xbf16>
    %c0_1 = arith.constant 0 : index
    %c0_2 = arith.constant 0 : index
    %1 = vector.load %arg2[%c0_1, %c0_2] : memref<64x32xbf16, #tpu.memory_space<vmem>>, vector<64x32xbf16>
    %cst = arith.constant dense<0.000000e+00> : vector<16x32xf32>
    %2 = tpu.matmul %0, %1, %cst {dimension_numbers = #tpu.dot_dimension_numbers<[1], [0], [0], [1], [0, 0, 1, 1], [], []>} : vector<16x64xbf16>, vector<64x32xbf16>, vector<16x32xf32> -> vector<16x32xf32>
    %c0_3 = arith.constant 0 : index
    %c0_4 = arith.constant 0 : index
    %3 = vector.load %arg3[%c0_3, %c0_4] : memref<1x32xf32, #tpu.memory_space<vmem>>, vector<1x32xf32>
    %4 = vector.broadcast %3 : vector<1x32xf32> to vector<16x32xf32>
    %5 = arith.addf %2, %4 : vector<16x32xf32>
    %c0_5 = arith.constant 0 : index
    %c0_6 = arith.constant 0 : index
    %6 = vector.load %arg4[%c0_5, %c0_6] : memref<16x32xf32, #tpu.memory_space<vmem>>, vector<16x32xf32>
    tpu.vector_store %arg4[%c0_5, %c0_6], %5 {strides = array<i32>} : memref<16x32xf32, #tpu.memory_space<vmem>>, vector<16x32xf32>,
    return
  }
  func.func @transform_0(%arg0: i32) -> (i32, i32) {
    %c0_i32 = arith.constant 0 : i32
    %c0_i32_0 = arith.constant 0 : i32
    return %arg0, %c0_i32 : i32, i32
  }
  func.func @transform_1(%arg0: i32) -> (i32, i32) {
    %c0_i32 = arith.constant 0 : i32
    %c0_i32_0 = arith.constant 0 : i32
    %c0_i32_1 = arith.constant 0 : i32
    return %c0_i32, %c0_i32_0 : i32, i32
  }
  func.func @transform_2(%arg0: i32) -> (i32, i32) {
    %c0_i32 = arith.constant 0 : i32
    %c0_i32_0 = arith.constant 0 : i32
    %c0_i32_1 = arith.constant 0 : i32
    return %c0_i32, %c0_i32_0 : i32, i32
  }
  func.func @transform_3(%arg0: i32) -> (i32, i32) {
    %c0_i32 = arith.constant 0 : i32
    %c0_i32_0 = arith.constant 0 : i32
    return %arg0, %c0_i32 : i32, i32
  }
}

module attributes {stable_mosaic.version = 11 : i64} {
  func.func @_encoder_kernel(%arg0: i32, %arg1: memref<1x17x32xf32, #tpu.memory_space<vmem>>, %arg2: memref<1x32xf32, #tpu.memory_space<vmem>>, %arg3: memref<1x32xf32, #tpu.memory_space<vmem>>, %arg4: memref<32x96xbf16, #tpu.memory_space<vmem>>, %arg5: memref<1x96xf32, #tpu.memory_space<vmem>>, %arg6: memref<4x8x32xbf16, #tpu.memory_space<vmem>>, %arg7: memref<1x32xf32, #tpu.memory_space<vmem>>, %arg8: memref<1x32xf32, #tpu.memory_space<vmem>>, %arg9: memref<1x32xf32, #tpu.memory_space<vmem>>, %arg10: memref<32x64xbf16, #tpu.memory_space<vmem>>, %arg11: memref<1x64xf32, #tpu.memory_space<vmem>>, %arg12: memref<64x32xbf16, #tpu.memory_space<vmem>>, %arg13: memref<1x32xf32, #tpu.memory_space<vmem>>, %arg14: memref<1x17x32xf32, #tpu.memory_space<vmem>>) attributes {dimension_semantics = [#tpu.dimension_semantics<parallel>], iteration_bounds = array<i64: 2>, scalar_prefetch = 0 : i64, scratch_operands = 0 : i64, tpu.core_type = #tpu.core_type<tc>, window_params = [{transform_indices = @transform_0, window_bounds = array<i64: 1, 17, 32>}, {pipeline_mode = #tpu.pipeline_mode<synchronous>, transform_indices = @transform_1, window_bounds = array<i64: 1, 32>}, {pipeline_mode = #tpu.pipeline_mode<synchronous>, transform_indices = @transform_2, window_bounds = array<i64: 1, 32>}, {pipeline_mode = #tpu.pipeline_mode<synchronous>, transform_indices = @transform_3, window_bounds = array<i64: 32, 96>}, {pipeline_mode = #tpu.pipeline_mode<synchronous>, transform_indices = @transform_4, window_bounds = array<i64: 1, 96>}, {pipeline_mode = #tpu.pipeline_mode<synchronous>, transform_indices = @transform_5, window_bounds = array<i64: 4, 8, 32>}, {pipeline_mode = #tpu.pipeline_mode<synchronous>, transform_indices = @transform_6, window_bounds = array<i64: 1, 32>}, {pipeline_mode = #tpu.pipeline_mode<synchronous>, transform_indices = @transform_7, window_bounds = array<i64: 1, 32>}, {pipeline_mode = #tpu.pipeline_mode<synchronous>, transform_indices = @transform_8, window_bounds = array<i64: 1, 32>}, {pipeline_mode = #tpu.pipeline_mode<synchronous>, transform_indices = @transform_9, window_bounds = array<i64: 32, 64>}, {pipeline_mode = #tpu.pipeline_mode<synchronous>, transform_indices = @transform_10, window_bounds = array<i64: 1, 64>}, {pipeline_mode = #tpu.pipeline_mode<synchronous>, transform_indices = @transform_11, window_bounds = array<i64: 64, 32>}, {pipeline_mode = #tpu.pipeline_mode<synchronous>, transform_indices = @transform_12, window_bounds = array<i64: 1, 32>}, {transform_indices = @transform_13, window_bounds = array<i64: 1, 17, 32>}]} {
    %c0 = arith.constant 0 : index
    %c0_0 = arith.constant 0 : index
    %c0_1 = arith.constant 0 : index
    %0 = vector.load %arg1[%c0, %c0_0, %c0_1] : memref<1x17x32xf32, #tpu.memory_space<vmem>>, vector<1x17x32xf32>
    %1 = vector.shape_cast %0 : vector<1x17x32xf32> to vector<17x32xf32>
    %c0_2 = arith.constant 0 : index
    %c0_3 = arith.constant 0 : index
    %2 = vector.load %arg2[%c0_2, %c0_3] : memref<1x32xf32, #tpu.memory_space<vmem>>, vector<1x32xf32>
    %c0_4 = arith.constant 0 : index
    %c0_5 = arith.constant 0 : index
    %3 = vector.load %arg3[%c0_4, %c0_5] : memref<1x32xf32, #tpu.memory_space<vmem>>, vector<1x32xf32>
    %cst = arith.constant dense<0.000000e+00> : vector<17xf32>
    %4 = vector.multi_reduction <add>, %1, %cst [1] : vector<17x32xf32> to vector<17xf32>
    %5 = vector.shape_cast %4 : vector<17xf32> to vector<17x1xf32>
    %cst_6 = arith.constant 3.200000e+01 : f32
    %6 = vector.broadcast %cst_6 : f32 to vector<17x1xf32>
    %7 = arith.divf %5, %6 : vector<17x1xf32>
    %8 = vector.broadcast %7 : vector<17x1xf32> to vector<17x32xf32>
    %9 = arith.subf %1, %8 : vector<17x32xf32>
    %10 = arith.mulf %9, %9 : vector<17x32xf32>
    %cst_7 = arith.constant dense<0.000000e+00> : vector<17xf32>
    %11 = vector.multi_reduction <add>, %10, %cst_7 [1] : vector<17x32xf32> to vector<17xf32>
    %12 = vector.shape_cast %11 : vector<17xf32> to vector<17x1xf32>
    %cst_8 = arith.constant 3.200000e+01 : f32
    %13 = vector.broadcast %cst_8 : f32 to vector<17x1xf32>
    %14 = arith.divf %12, %13 : vector<17x1xf32>
    %15 = vector.broadcast %7 : vector<17x1xf32> to vector<17x32xf32>
    %16 = arith.subf %1, %15 : vector<17x32xf32>
    %cst_9 = arith.constant 9.99999974E-6 : f32
    %17 = vector.broadcast %cst_9 : f32 to vector<17x1xf32>
    %18 = arith.addf %14, %17 : vector<17x1xf32>
    %19 = math.rsqrt %18 : vector<17x1xf32>
    %20 = vector.broadcast %19 : vector<17x1xf32> to vector<17x32xf32>
    %21 = arith.mulf %16, %20 : vector<17x32xf32>
    %22 = vector.broadcast %2 : vector<1x32xf32> to vector<17x32xf32>
    %23 = arith.mulf %21, %22 : vector<17x32xf32>
    %24 = vector.broadcast %3 : vector<1x32xf32> to vector<17x32xf32>
    %25 = arith.addf %23, %24 : vector<17x32xf32>
    %26 = arith.truncf %25 : vector<17x32xf32> to vector<17x32xbf16>
    %c0_10 = arith.constant 0 : index
    %c0_11 = arith.constant 0 : index
    %27 = vector.load %arg4[%c0_10, %c0_11] : memref<32x96xbf16, #tpu.memory_space<vmem>>, vector<32x96xbf16>
    %cst_12 = arith.constant dense<0.000000e+00> : vector<17x96xf32>
    %28 = tpu.matmul %26, %27, %cst_12 {dimension_numbers = #tpu.dot_dimension_numbers<[1], [0], [0], [1], [0, 0, 1, 1], [], []>} : vector<17x32xbf16>, vector<32x96xbf16>, vector<17x96xf32> -> vector<17x96xf32>
    %c0_13 = arith.constant 0 : index
    %c0_14 = arith.constant 0 : index
    %29 = vector.load %arg5[%c0_13, %c0_14] : memref<1x96xf32, #tpu.memory_space<vmem>>, vector<1x96xf32>
    %30 = vector.broadcast %29 : vector<1x96xf32> to vector<17x96xf32>
    %31 = arith.addf %28, %30 : vector<17x96xf32>
    %32 = vector.extract_strided_slice %31 {offsets = [0, 0], sizes = [17, 8], strides = [1, 1]} : vector<17x96xf32> to vector<17x8xf32>
    %33 = vector.extract_strided_slice %31 {offsets = [0, 8], sizes = [17, 8], strides = [1, 1]} : vector<17x96xf32> to vector<17x8xf32>
    %34 = vector.extract_strided_slice %31 {offsets = [0, 16], sizes = [17, 8], strides = [1, 1]} : vector<17x96xf32> to vector<17x8xf32>
    %35 = vector.extract_strided_slice %31 {offsets = [0, 24], sizes = [17, 8], strides = [1, 1]} : vector<17x96xf32> to vector<17x8xf32>
    %36 = vector.shape_cast %32 : vector<17x8xf32> to vector<1x17x8xf32>
    %37 = vector.shape_cast %33 : vector<17x8xf32> to vector<1x17x8xf32>
    %38 = vector.shape_cast %34 : vector<17x8xf32> to vector<1x17x8xf32>
    %39 = vector.shape_cast %35 : vector<17x8xf32> to vector<1x17x8xf32>
    %40 = tpu.concatenate %36, %37, %38, %39 in 0 : vector<1x17x8xf32>, vector<1x17x8xf32>, vector<1x17x8xf32>, vector<1x17x8xf32> -> vector<4x17x8xf32>
    %cst_15 = arith.constant 0.353553385 : f32
    %41 = vector.broadcast %cst_15 : f32 to vector<4x17x8xf32>
    %42 = arith.mulf %40, %41 : vector<4x17x8xf32>
    %43 = arith.truncf %42 : vector<4x17x8xf32> to vector<4x17x8xbf16>
    %44 = vector.extract_strided_slice %31 {offsets = [0, 32], sizes = [17, 8], strides = [1, 1]} : vector<17x96xf32> to vector<17x8xf32>
    %45 = vector.extract_strided_slice %31 {offsets = [0, 40], sizes = [17, 8], strides = [1, 1]} : vector<17x96xf32> to vector<17x8xf32>
    %46 = vector.extract_strided_slice %31 {offsets = [0, 48], sizes = [17, 8], strides = [1, 1]} : vector<17x96xf32> to vector<17x8xf32>
    %47 = vector.extract_strided_slice %31 {offsets = [0, 56], sizes = [17, 8], strides = [1, 1]} : vector<17x96xf32> to vector<17x8xf32>
    %48 = vector.shape_cast %44 : vector<17x8xf32> to vector<1x17x8xf32>
    %49 = vector.shape_cast %45 : vector<17x8xf32> to vector<1x17x8xf32>
    %50 = vector.shape_cast %46 : vector<17x8xf32> to vector<1x17x8xf32>
    %51 = vector.shape_cast %47 : vector<17x8xf32> to vector<1x17x8xf32>
    %52 = tpu.concatenate %48, %49, %50, %51 in 0 : vector<1x17x8xf32>, vector<1x17x8xf32>, vector<1x17x8xf32>, vector<1x17x8xf32> -> vector<4x17x8xf32>
    %53 = arith.truncf %52 : vector<4x17x8xf32> to vector<4x17x8xbf16>
    %54 = vector.extract_strided_slice %31 {offsets = [0, 64], sizes = [17, 8], strides = [1, 1]} : vector<17x96xf32> to vector<17x8xf32>
    %55 = vector.extract_strided_slice %31 {offsets = [0, 72], sizes = [17, 8], strides = [1, 1]} : vector<17x96xf32> to vector<17x8xf32>
    %56 = vector.extract_strided_slice %31 {offsets = [0, 80], sizes = [17, 8], strides = [1, 1]} : vector<17x96xf32> to vector<17x8xf32>
    %57 = vector.extract_strided_slice %31 {offsets = [0, 88], sizes = [17, 8], strides = [1, 1]} : vector<17x96xf32> to vector<17x8xf32>
    %58 = vector.shape_cast %54 : vector<17x8xf32> to vector<1x17x8xf32>
    %59 = vector.shape_cast %55 : vector<17x8xf32> to vector<1x17x8xf32>
    %60 = vector.shape_cast %56 : vector<17x8xf32> to vector<1x17x8xf32>
    %61 = vector.shape_cast %57 : vector<17x8xf32> to vector<1x17x8xf32>
    %62 = tpu.concatenate %58, %59, %60, %61 in 0 : vector<1x17x8xf32>, vector<1x17x8xf32>, vector<1x17x8xf32>, vector<1x17x8xf32> -> vector<4x17x8xf32>
    %63 = arith.truncf %62 : vector<4x17x8xf32> to vector<4x17x8xbf16>
    %cst_16 = arith.constant dense<0.000000e+00> : vector<4x17x17xf32>
    %64 = tpu.matmul %43, %53, %cst_16 {dimension_numbers = #tpu.dot_dimension_numbers<[2], [2], [1], [1], [0, 0, 0, 1, 1, 1], [0], [0]>} : vector<4x17x8xbf16>, vector<4x17x8xbf16>, vector<4x17x17xf32> -> vector<4x17x17xf32>
    %cst_17 = arith.constant dense<0xFF800000> : vector<4x17xf32>
    %65 = vector.multi_reduction <maximumf>, %64, %cst_17 [2] : vector<4x17x17xf32> to vector<4x17xf32>
    %66 = vector.shape_cast %65 : vector<4x17xf32> to vector<4x17x1xf32>
    %67 = vector.broadcast %66 : vector<4x17x1xf32> to vector<4x17x17xf32>
    %68 = arith.subf %64, %67 : vector<4x17x17xf32>
    %69 = math.exp %68 : vector<4x17x17xf32>
    %cst_18 = arith.constant dense<0.000000e+00> : vector<4x17xf32>
    %70 = vector.multi_reduction <add>, %69, %cst_18 [2] : vector<4x17x17xf32> to vector<4x17xf32>
    %71 = vector.shape_cast %70 : vector<4x17xf32> to vector<4x17x1xf32>
    %72 = tpu.reciprocal %71 {approx = true} : vector<4x17x1xf32> -> vector<4x17x1xf32>
    %73 = vector.broadcast %72 : vector<4x17x1xf32> to vector<4x17x17xf32>
    %74 = arith.mulf %69, %73 : vector<4x17x17xf32>
    %75 = arith.truncf %74 : vector<4x17x17xf32> to vector<4x17x17xbf16>
    %cst_19 = arith.constant dense<0.000000e+00> : vector<4x17x8xf32>
    %76 = tpu.matmul %75, %63, %cst_19 {dimension_numbers = #tpu.dot_dimension_numbers<[2], [1], [1], [2], [0, 0, 0, 1, 1, 2], [0], [0]>} : vector<4x17x17xbf16>, vector<4x17x8xbf16>, vector<4x17x8xf32> -> vector<4x17x8xf32>
    %77 = arith.truncf %76 : vector<4x17x8xf32> to vector<4x17x8xbf16>
    %c0_20 = arith.constant 0 : index
    %c0_21 = arith.constant 0 : index
    %c0_22 = arith.constant 0 : index
    %78 = vector.load %arg6[%c0_20, %c0_21, %c0_22] : memref<4x8x32xbf16, #tpu.memory_space<vmem>>, vector<4x8x32xbf16>
    %cst_23 = arith.constant dense<0.000000e+00> : vector<4x17x32xf32>
    %79 = tpu.matmul %77, %78, %cst_23 {dimension_numbers = #tpu.dot_dimension_numbers<[2], [1], [1], [2], [0, 0, 0, 1, 1, 2], [0], [0]>} : vector<4x17x8xbf16>, vector<4x8x32xbf16>, vector<4x17x32xf32> -> vector<4x17x32xf32>
    %cst_24 = arith.constant dense<0.000000e+00> : vector<17x32xf32>
    %80 = vector.multi_reduction <add>, %79, %cst_24 [0] : vector<4x17x32xf32> to vector<17x32xf32>
    %81 = arith.addf %1, %80 : vector<17x32xf32>
    %c0_25 = arith.constant 0 : index
    %c0_26 = arith.constant 0 : index
    %82 = vector.load %arg7[%c0_25, %c0_26] : memref<1x32xf32, #tpu.memory_space<vmem>>, vector<1x32xf32>
    %83 = vector.broadcast %82 : vector<1x32xf32> to vector<17x32xf32>
    %84 = arith.addf %81, %83 : vector<17x32xf32>
    %c0_27 = arith.constant 0 : index
    %c0_28 = arith.constant 0 : index
    %85 = vector.load %arg8[%c0_27, %c0_28] : memref<1x32xf32, #tpu.memory_space<vmem>>, vector<1x32xf32>
    %c0_29 = arith.constant 0 : index
    %c0_30 = arith.constant 0 : index
    %86 = vector.load %arg9[%c0_29, %c0_30] : memref<1x32xf32, #tpu.memory_space<vmem>>, vector<1x32xf32>
    %cst_31 = arith.constant dense<0.000000e+00> : vector<17xf32>
    %87 = vector.multi_reduction <add>, %84, %cst_31 [1] : vector<17x32xf32> to vector<17xf32>
    %88 = vector.shape_cast %87 : vector<17xf32> to vector<17x1xf32>
    %cst_32 = arith.constant 3.200000e+01 : f32
    %89 = vector.broadcast %cst_32 : f32 to vector<17x1xf32>
    %90 = arith.divf %88, %89 : vector<17x1xf32>
    %91 = vector.broadcast %90 : vector<17x1xf32> to vector<17x32xf32>
    %92 = arith.subf %84, %91 : vector<17x32xf32>
    %93 = arith.mulf %92, %92 : vector<17x32xf32>
    %cst_33 = arith.constant dense<0.000000e+00> : vector<17xf32>
    %94 = vector.multi_reduction <add>, %93, %cst_33 [1] : vector<17x32xf32> to vector<17xf32>
    %95 = vector.shape_cast %94 : vector<17xf32> to vector<17x1xf32>
    %cst_34 = arith.constant 3.200000e+01 : f32
    %96 = vector.broadcast %cst_34 : f32 to vector<17x1xf32>
    %97 = arith.divf %95, %96 : vector<17x1xf32>
    %98 = vector.broadcast %90 : vector<17x1xf32> to vector<17x32xf32>
    %99 = arith.subf %84, %98 : vector<17x32xf32>
    %cst_35 = arith.constant 9.99999974E-6 : f32
    %100 = vector.broadcast %cst_35 : f32 to vector<17x1xf32>
    %101 = arith.addf %97, %100 : vector<17x1xf32>
    %102 = math.rsqrt %101 : vector<17x1xf32>
    %103 = vector.broadcast %102 : vector<17x1xf32> to vector<17x32xf32>
    %104 = arith.mulf %99, %103 : vector<17x32xf32>
    %105 = vector.broadcast %85 : vector<1x32xf32> to vector<17x32xf32>
    %106 = arith.mulf %104, %105 : vector<17x32xf32>
    %107 = vector.broadcast %86 : vector<1x32xf32> to vector<17x32xf32>
    %108 = arith.addf %106, %107 : vector<17x32xf32>
    %109 = arith.truncf %108 : vector<17x32xf32> to vector<17x32xbf16>
    %c0_36 = arith.constant 0 : index
    %c0_37 = arith.constant 0 : index
    %110 = vector.load %arg10[%c0_36, %c0_37] : memref<32x64xbf16, #tpu.memory_space<vmem>>, vector<32x64xbf16>
    %cst_38 = arith.constant dense<0.000000e+00> : vector<17x64xf32>
    %111 = tpu.matmul %109, %110, %cst_38 {dimension_numbers = #tpu.dot_dimension_numbers<[1], [0], [0], [1], [0, 0, 1, 1], [], []>} : vector<17x32xbf16>, vector<32x64xbf16>, vector<17x64xf32> -> vector<17x64xf32>
    %c0_39 = arith.constant 0 : index
    %c0_40 = arith.constant 0 : index
    %112 = vector.load %arg11[%c0_39, %c0_40] : memref<1x64xf32, #tpu.memory_space<vmem>>, vector<1x64xf32>
    %113 = vector.broadcast %112 : vector<1x64xf32> to vector<17x64xf32>
    %114 = arith.addf %111, %113 : vector<17x64xf32>
    %cst_41 = arith.constant 5.000000e-01 : f32
    %115 = vector.broadcast %cst_41 : f32 to vector<17x64xf32>
    %116 = arith.mulf %115, %114 : vector<17x64xf32>
    %cst_42 = arith.constant 4.471500e-02 : f32
    %117 = vector.broadcast %cst_42 : f32 to vector<17x64xf32>
    %118 = arith.mulf %117, %114 : vector<17x64xf32>
    %119 = arith.mulf %118, %114 : vector<17x64xf32>
    %120 = arith.mulf %119, %114 : vector<17x64xf32>
    %121 = arith.addf %114, %120 : vector<17x64xf32>
    %cst_43 = arith.constant 0.797884583 : f32
    %122 = vector.broadcast %cst_43 : f32 to vector<17x64xf32>
    %123 = arith.mulf %122, %121 : vector<17x64xf32>
    %124 = math.tanh %123 : vector<17x64xf32>
    %cst_44 = arith.constant 1.000000e+00 : f32
    %125 = vector.broadcast %cst_44 : f32 to vector<17x64xf32>
    %126 = arith.addf %125, %124 : vector<17x64xf32>
    %127 = arith.mulf %116, %126 : vector<17x64xf32>
    %128 = arith.truncf %127 : vector<17x64xf32> to vector<17x64xbf16>
    %c0_45 = arith.constant 0 : index
    %c0_46 = arith.constant 0 : index
    %129 = vector.load %arg12[%c0_45, %c0_46] : memref<64x32xbf16, #tpu.memory_space<vmem>>, vector<64x32xbf16>
    %cst_47 = arith.constant dense<0.000000e+00> : vector<17x32xf32>
    %130 = tpu.matmul %128, %129, %cst_47 {dimension_numbers = #tpu.dot_dimension_numbers<[1], [0], [0], [1], [0, 0, 1, 1], [], []>} : vector<17x64xbf16>, vector<64x32xbf16>, vector<17x32xf32> -> vector<17x32xf32>
    %c0_48 = arith.constant 0 : index
    %c0_49 = arith.constant 0 : index
    %131 = vector.load %arg13[%c0_48, %c0_49] : memref<1x32xf32, #tpu.memory_space<vmem>>, vector<1x32xf32>
    %132 = vector.broadcast %131 : vector<1x32xf32> to vector<17x32xf32>
    %133 = arith.addf %130, %132 : vector<17x32xf32>
    %134 = arith.addf %84, %133 : vector<17x32xf32>
    %c0_50 = arith.constant 0 : index
    %c0_51 = arith.constant 0 : index
    %c0_52 = arith.constant 0 : index
    %135 = vector.load %arg14[%c0_50, %c0_51, %c0_52] : memref<1x17x32xf32, #tpu.memory_space<vmem>>, vector<1x17x32xf32>
    %136 = vector.shape_cast %135 : vector<1x17x32xf32> to vector<17x32xf32>
    %137 = vector.shape_cast %134 : vector<17x32xf32> to vector<1x17x32xf32>
    tpu.vector_store %arg14[%c0_50, %c0_51, %c0_52], %137 {strides = array<i32>} : memref<1x17x32xf32, #tpu.memory_space<vmem>>, vector<1x17x32xf32>,
    return
  }
  func.func @transform_0(%arg0: i32) -> (i32, i32, i32) {
    %c0_i32 = arith.constant 0 : i32
    %c0_i32_0 = arith.constant 0 : i32
    %c0_i32_1 = arith.constant 0 : i32
    return %arg0, %c0_i32, %c0_i32_0 : i32, i32, i32
  }
  func.func @transform_1(%arg0: i32) -> (i32, i32) {
    %c0_i32 = arith.constant 0 : i32
    %c0_i32_0 = arith.constant 0 : i32
    %c0_i32_1 = arith.constant 0 : i32
    return %c0_i32, %c0_i32_0 : i32, i32
  }
  func.func @transform_2(%arg0: i32) -> (i32, i32) {
    %c0_i32 = arith.constant 0 : i32
    %c0_i32_0 = arith.constant 0 : i32
    %c0_i32_1 = arith.constant 0 : i32
    return %c0_i32, %c0_i32_0 : i32, i32
  }
  func.func @transform_3(%arg0: i32) -> (i32, i32) {
    %c0_i32 = arith.constant 0 : i32
    %c0_i32_0 = arith.constant 0 : i32
    %c0_i32_1 = arith.constant 0 : i32
    return %c0_i32, %c0_i32_0 : i32, i32
  }
  func.func @transform_4(%arg0: i32) -> (i32, i32) {
    %c0_i32 = arith.constant 0 : i32
    %c0_i32_0 = arith.constant 0 : i32
    %c0_i32_1 = arith.constant 0 : i32
    return %c0_i32, %c0_i32_0 : i32, i32
  }
  func.func @transform_5(%arg0: i32) -> (i32, i32, i32) {
    %c0_i32 = arith.constant 0 : i32
    %c0_i32_0 = arith.constant 0 : i32
    %c0_i32_1 = arith.constant 0 : i32
    %c0_i32_2 = arith.constant 0 : i32
    return %c0_i32, %c0_i32_0, %c0_i32_1 : i32, i32, i32
  }
  func.func @transform_6(%arg0: i32) -> (i32, i32) {
    %c0_i32 = arith.constant 0 : i32
    %c0_i32_0 = arith.constant 0 : i32
    %c0_i32_1 = arith.constant 0 : i32
    return %c0_i32, %c0_i32_0 : i32, i32
  }
  func.func @transform_7(%arg0: i32) -> (i32, i32) {
    %c0_i32 = arith.constant 0 : i32
    %c0_i32_0 = arith.constant 0 : i32
    %c0_i32_1 = arith.constant 0 : i32
    return %c0_i32, %c0_i32_0 : i32, i32
  }
  func.func @transform_8(%arg0: i32) -> (i32, i32) {
    %c0_i32 = arith.constant 0 : i32
    %c0_i32_0 = arith.constant 0 : i32
    %c0_i32_1 = arith.constant 0 : i32
    return %c0_i32, %c0_i32_0 : i32, i32
  }
  func.func @transform_9(%arg0: i32) -> (i32, i32) {
    %c0_i32 = arith.constant 0 : i32
    %c0_i32_0 = arith.constant 0 : i32
    %c0_i32_1 = arith.constant 0 : i32
    return %c0_i32, %c0_i32_0 : i32, i32
  }
  func.func @transform_10(%arg0: i32) -> (i32, i32) {
    %c0_i32 = arith.constant 0 : i32
    %c0_i32_0 = arith.constant 0 : i32
    %c0_i32_1 = arith.constant 0 : i32
    return %c0_i32, %c0_i32_0 : i32, i32
  }
  func.func @transform_11(%arg0: i32) -> (i32, i32) {
    %c0_i32 = arith.constant 0 : i32
    %c0_i32_0 = arith.constant 0 : i32
    %c0_i32_1 = arith.constant 0 : i32
    return %c0_i32, %c0_i32_0 : i32, i32
  }
  func.func @transform_12(%arg0: i32) -> (i32, i32) {
    %c0_i32 = arith.constant 0 : i32
    %c0_i32_0 = arith.constant 0 : i32
    %c0_i32_1 = arith.constant 0 : i32
    return %c0_i32, %c0_i32_0 : i32, i32
  }
  func.func @transform_13(%arg0: i32) -> (i32, i32, i32) {
    %c0_i32 = arith.constant 0 : i32
    %c0_i32_0 = arith.constant 0 : i32
    %c0_i32_1 = arith.constant 0 : i32
    return %arg0, %c0_i32, %c0_i32_0 : i32, i32, i32
  }
}

module attributes {stable_mosaic.version = 11 : i64} {
  func.func @_classifier_kernel(%arg0: i32, %arg1: memref<2x32xf32, #tpu.memory_space<vmem>>, %arg2: memref<1x32xf32, #tpu.memory_space<vmem>>, %arg3: memref<1x32xf32, #tpu.memory_space<vmem>>, %arg4: memref<32x128xbf16, #tpu.memory_space<vmem>>, %arg5: memref<1x128xf32, #tpu.memory_space<vmem>>, %arg6: memref<2x128xf32, #tpu.memory_space<vmem>>) attributes {dimension_semantics = [#tpu.dimension_semantics<arbitrary>], iteration_bounds = array<i64: 1>, scalar_prefetch = 0 : i64, scratch_operands = 0 : i64, tpu.core_type = #tpu.core_type<tc>, window_params = [{pipeline_mode = #tpu.pipeline_mode<synchronous>, transform_indices = @transform_0, window_bounds = array<i64: 2, 32>}, {pipeline_mode = #tpu.pipeline_mode<synchronous>, transform_indices = @transform_1, window_bounds = array<i64: 1, 32>}, {pipeline_mode = #tpu.pipeline_mode<synchronous>, transform_indices = @transform_2, window_bounds = array<i64: 1, 32>}, {pipeline_mode = #tpu.pipeline_mode<synchronous>, transform_indices = @transform_3, window_bounds = array<i64: 32, 128>}, {pipeline_mode = #tpu.pipeline_mode<synchronous>, transform_indices = @transform_4, window_bounds = array<i64: 1, 128>}, {pipeline_mode = #tpu.pipeline_mode<synchronous>, transform_indices = @transform_5, window_bounds = array<i64: 2, 128>}]} {
    %c0 = arith.constant 0 : index
    %c0_0 = arith.constant 0 : index
    %0 = vector.load %arg1[%c0, %c0_0] : memref<2x32xf32, #tpu.memory_space<vmem>>, vector<2x32xf32>
    %c0_1 = arith.constant 0 : index
    %c0_2 = arith.constant 0 : index
    %1 = vector.load %arg2[%c0_1, %c0_2] : memref<1x32xf32, #tpu.memory_space<vmem>>, vector<1x32xf32>
    %c0_3 = arith.constant 0 : index
    %c0_4 = arith.constant 0 : index
    %2 = vector.load %arg3[%c0_3, %c0_4] : memref<1x32xf32, #tpu.memory_space<vmem>>, vector<1x32xf32>
    %cst = arith.constant dense<0.000000e+00> : vector<2xf32>
    %3 = vector.multi_reduction <add>, %0, %cst [1] : vector<2x32xf32> to vector<2xf32>
    %4 = vector.shape_cast %3 : vector<2xf32> to vector<2x1xf32>
    %cst_5 = arith.constant 3.200000e+01 : f32
    %5 = vector.broadcast %cst_5 : f32 to vector<2x1xf32>
    %6 = arith.divf %4, %5 : vector<2x1xf32>
    %7 = vector.broadcast %6 : vector<2x1xf32> to vector<2x32xf32>
    %8 = arith.subf %0, %7 : vector<2x32xf32>
    %9 = arith.mulf %8, %8 : vector<2x32xf32>
    %cst_6 = arith.constant dense<0.000000e+00> : vector<2xf32>
    %10 = vector.multi_reduction <add>, %9, %cst_6 [1] : vector<2x32xf32> to vector<2xf32>
    %11 = vector.shape_cast %10 : vector<2xf32> to vector<2x1xf32>
    %cst_7 = arith.constant 3.200000e+01 : f32
    %12 = vector.broadcast %cst_7 : f32 to vector<2x1xf32>
    %13 = arith.divf %11, %12 : vector<2x1xf32>
    %14 = vector.broadcast %6 : vector<2x1xf32> to vector<2x32xf32>
    %15 = arith.subf %0, %14 : vector<2x32xf32>
    %cst_8 = arith.constant 9.99999974E-6 : f32
    %16 = vector.broadcast %cst_8 : f32 to vector<2x1xf32>
    %17 = arith.addf %13, %16 : vector<2x1xf32>
    %18 = math.rsqrt %17 : vector<2x1xf32>
    %19 = vector.broadcast %18 : vector<2x1xf32> to vector<2x32xf32>
    %20 = arith.mulf %15, %19 : vector<2x32xf32>
    %21 = vector.broadcast %1 : vector<1x32xf32> to vector<2x32xf32>
    %22 = arith.mulf %20, %21 : vector<2x32xf32>
    %23 = vector.broadcast %2 : vector<1x32xf32> to vector<2x32xf32>
    %24 = arith.addf %22, %23 : vector<2x32xf32>
    %25 = arith.truncf %24 : vector<2x32xf32> to vector<2x32xbf16>
    %c0_9 = arith.constant 0 : index
    %c0_10 = arith.constant 0 : index
    %26 = vector.load %arg4[%c0_9, %c0_10] : memref<32x128xbf16, #tpu.memory_space<vmem>>, vector<32x128xbf16>
    %cst_11 = arith.constant dense<0.000000e+00> : vector<2x128xf32>
    %27 = tpu.matmul %25, %26, %cst_11 {dimension_numbers = #tpu.dot_dimension_numbers<[1], [0], [0], [1], [0, 0, 1, 1], [], []>} : vector<2x32xbf16>, vector<32x128xbf16>, vector<2x128xf32> -> vector<2x128xf32>
    %c0_12 = arith.constant 0 : index
    %c0_13 = arith.constant 0 : index
    %28 = vector.load %arg5[%c0_12, %c0_13] : memref<1x128xf32, #tpu.memory_space<vmem>>, vector<1x128xf32>
    %29 = vector.broadcast %28 : vector<1x128xf32> to vector<2x128xf32>
    %30 = arith.addf %27, %29 : vector<2x128xf32>
    %c0_14 = arith.constant 0 : index
    %c0_15 = arith.constant 0 : index
    %31 = vector.load %arg6[%c0_14, %c0_15] : memref<2x128xf32, #tpu.memory_space<vmem>>, vector<2x128xf32>
    tpu.vector_store %arg6[%c0_14, %c0_15], %30 {strides = array<i32>} : memref<2x128xf32, #tpu.memory_space<vmem>>, vector<2x128xf32>,
    return
  }
  func.func @transform_0(%arg0: i32) -> (i32, i32) {
    %c0_i32 = arith.constant 0 : i32
    %c0_i32_0 = arith.constant 0 : i32
    %c0_i32_1 = arith.constant 0 : i32
    return %c0_i32, %c0_i32_0 : i32, i32
  }
  func.func @transform_1(%arg0: i32) -> (i32, i32) {
    %c0_i32 = arith.constant 0 : i32
    %c0_i32_0 = arith.constant 0 : i32
    %c0_i32_1 = arith.constant 0 : i32
    return %c0_i32, %c0_i32_0 : i32, i32
  }
  func.func @transform_2(%arg0: i32) -> (i32, i32) {
    %c0_i32 = arith.constant 0 : i32
    %c0_i32_0 = arith.constant 0 : i32
    %c0_i32_1 = arith.constant 0 : i32
    return %c0_i32, %c0_i32_0 : i32, i32
  }
  func.func @transform_3(%arg0: i32) -> (i32, i32) {
    %c0_i32 = arith.constant 0 : i32
    %c0_i32_0 = arith.constant 0 : i32
    %c0_i32_1 = arith.constant 0 : i32
    return %c0_i32, %c0_i32_0 : i32, i32
  }
  func.func @transform_4(%arg0: i32) -> (i32, i32) {
    %c0_i32 = arith.constant 0 : i32
    %c0_i32_0 = arith.constant 0 : i32
    %c0_i32_1 = arith.constant 0 : i32
    return %c0_i32, %c0_i32_0 : i32, i32
  }
  func.func @transform_5(%arg0: i32) -> (i32, i32) {
    %c0_i32 = arith.constant 0 : i32
    %c0_i32_0 = arith.constant 0 : i32
    %c0_i32_1 = arith.constant 0 : i32
    return %c0_i32, %c0_i32_0 : i32, i32
  }
}

</mosaic_0001>

<bundles_post_ra>
// kernel: vit_forward.4
= control target key start
LH: loop header
LB: loop body
LE: loop exit
PB: predicated region body
PF: predicated region fallthrough
CT: control target
= control target key end

     0   :  { %8 = vsyncpa [#allocation3], 0  ;;  %s971_s0 = inlined_call_operand.hbm [shape: bf16[32,64], index: 0, kind: input, shape index: {}]   ;;  %s972_s1 = inlined_call_operand.hbm [shape: bf16[64,32], index: 1, kind: input, shape index: {}]   ;;  %s973_s2 = inlined_call_operand.hbm [shape: f32[1,32], index: 2, kind: input, shape index: {}]   ;;  %s974_s3 = inlined_call_operand.hbm [shape: f32[32,32], index: 3, kind: output, shape index: {}]  }
   0x1   :  { %10 = vsyncpa [#allocation3 + $0x1], 0 }
   0x2   :  { %11 = vsyncpa [#allocation6], 0 }
   0x3   :  { %12 = vsyncpa [#allocation4], 0 }
   0x4   :  { %14 = vsyncpa [#allocation4 + $0x1], 0  ;;  %s729_s12 = smov 0   ;;  %s731_s13 = smov 0  }
   0x5   :  { %s733_s14 = smov 0   ;;  %s735_s15 = smov 0  }
   0x6 LB: > { %s750_s16 = sadd.s32 4294967295, %s697_s15   ;;  %s419_s17 = sadd.s32 4294967294, %s697_s15   ;;  %s697_s15 = sphi %s735_s15, %s994_s15   ;;  %s693_s14 = sphi %s733_s14, %s993_s14   ;;  %s689_s13 = sphi %s731_s13, %s992_s13   ;;  %s685_s12 = sphi %s729_s12, %s991_s12  }
   0x7   : > { %p40_p0 = scmp.ne.s32.totalorder %s689_s13, %s685_s12  ;;  %p975_p1 = scmp.eq.s32.totalorder %s750_s16, 0 }
   0x8   : > { %p112_p3 = scmp.eq.s32.totalorder %s419_s17, 1  ;;  %p420_p5 = scmp.ge.s32.totalorder %s697_s15, 1 }
   0x9   : > { %p759_p4 = por %p975_p1, %p40_p0  ;;  %p119_p7 = scmp.lt.s32.totalorder %s697_s15, 3 }
   0xa   : > { %p764_p6 = por %p112_p3, %p40_p0  ;;  %s699_s21 = smov [#allocation5]  }
   0xb   : > { %s978_s18 = scalar_select %p759_p4, 1, 0 }
   0xc   : > { %s979_s19 = scalar_select %p764_p6, 1, 0 }
   0xd   : > { %p769_p8 = pnand %p420_p5, %p119_p7  ;;  %s131_s22 = sshll.u32 %s699_s21, 4  ;;  %s773_s22 = int_to_ptr.vmem [resolvable:$true] %s131_s22 }
   0xe   : > { %s700_s24 = smov [#allocation7]   ;;  %s541_s28 = scalar_lea.hbm %s972_s1, 512 }
   0xf   : > { %p475_p9 = pneg %p769_p8  ;;  %s145_s25 = sshll.u32 %s700_s24, 4  ;;  %s784_s25 = int_to_ptr.vmem [resolvable:$true] %s145_s25 }
  0x10   : > { %p542_p12 = scmp.ne.s32.totalorder %s972_s1, %s541_s28  ;;  %p548_p5 = scmp.lt.u32.totalorder %s541_s28, %s972_s1 }
  0x11   : > { %p780_p11 = pnand %p475_p9, %p975_p1 }
  0x13   : > { %p543_p13 = pneg %p780_p11 }
  0x15   : > { %p544_p0 = pnand %p543_p13, %p542_p12 }
  0x17   : > { %p545_p3 = pneg %p544_p0 }
  0x19   : > { %p550_p7 = pnand %p548_p5, %p545_p3 }
  0x1b   : > { %553 = shalt.err (!%p550_p7)
}
  0x1c   : > { %s554_s6 = scalar_lea.vmem %s773_s22, 512  ;;  %p562_p2 = scmp.lt.s32.totalorder %s773_s22, %s773_s22 }
  0x1d   : > { %p555_p9 = scmp.ne.s32.totalorder %s773_s22, %s554_s6  ;;  %p563_p12 = scmp.lt.s32.totalorder %s554_s6, %s554_s6 }
  0x1f   : > { %p557_p10 = pnand %p555_p9, %p543_p13  ;;  %p564_p0 = por %p563_p12, %p562_p2 }
  0x21   : > { %p558_p1 = pneg %p557_p10 }
  0x23   : > { %p565_p6 = pnand %p564_p0, %p558_p1 }
  0x25   : > { %568 = shalt.err (!%p565_p6)
}
  0x26   : > { %s701_s7 = smov 64   ;;  %s702_s8 = smov 4  }
  0x27   : > { %478 = dma.hbm_to_vmem [thread:$0]  (!%p780_p11), %s972_s1, 512, %s773_s22, [#allocation6], %s701_s7, %s701_s7, %s702_s8  }
  0x28   : > { %s569_s21 = scalar_lea.hbm %s973_s2, 16 }
  0x29   : > { %p570_p1 = scmp.ne.s32.totalorder %s973_s2, %s569_s21  ;;  %p576_p10 = scmp.lt.u32.totalorder %s569_s21, %s973_s2 }
  0x2b   : > { %p572_p2 = pnand %p570_p1, %p543_p13 }
  0x2d   : > { %p573_p6 = pneg %p572_p2 }
  0x2f   : > { %p578_p3 = pnand %p576_p10, %p573_p6 }
  0x31   : > { %581 = shalt.err (!%p578_p3)
}
  0x32   : > { %s582_s22 = scalar_lea.vmem %s784_s25, 16  ;;  %s589_s29 = scalar_lea.vmem %s784_s25, 32 }
  0x33   : > { %p583_p5 = scmp.ne.s32.totalorder %s784_s25, %s582_s22  ;;  %p590_p12 = scmp.lt.s32.totalorder %s784_s25, %s784_s25 }
  0x34   : > { %p591_p0 = scmp.lt.s32.totalorder %s589_s29, %s582_s22 }
  0x35   : > { %p585_p7 = pnand %p583_p5, %p543_p13 }
  0x36   : > { %p592_p1 = por %p591_p0, %p590_p12 }
  0x37   : > { %p586_p9 = pneg %p585_p7 }
  0x39   : > { %p593_p2 = pnand %p592_p1, %p586_p9 }
  0x3b   : > { %596 = shalt.err (!%p593_p2)
}
  0x3c   : > { %481 = dma.hbm_to_vmem [thread:$0]  (!%p780_p11), %s973_s2, 16, %s784_s25, [#allocation6]  }
  0x3d   : > { %s843_s5 = sadd.s32 1, %s697_s15   ;;  %s27_s23 = sadd.s32 1, %s693_s14 }
  0x3e   : > { %s24_s6 = ssub.s32 %s697_s15, %s843_s5  ;;  %p34_p13 = scmp.ne.s32.totalorder %s693_s14, %s689_s13 }
  0x3f   : > { %p25_p6 = scmp.eq.s32.totalorder %s24_s6, 0  ;;  %p35_p10 = scmp.eq.s32.totalorder %s697_s15, 0 }
  0x40   : > { %p982_p3 = scmp.eq.s32.totalorder %s750_s16, 1  ;;  %p492_p7 = scmp.lt.s32.totalorder %s697_s15, 2 }
  0x41   : > { %s859_s10 = scalar_select %p25_p6, %s693_s14, %s27_s23  }
  0x42   : > { %p853_p5 = por %p982_p3, %p34_p13  ;;  %p36_p9 = por %p35_p10, %p34_p13 }
  0x43   : > { %s156_s11 = sand.u32 1, %s693_s14   ;;  %s444_s25 = sshll.u32 %s697_s15, 7 }
  0x44   : > { %s983_s9 = scalar_select %p853_p5, 1, 0 }
  0x45   : > { %s424_s17 = sshll.u32 %s156_s11, 3  ;;  %s866_s26 = scalar_lea.hbm %s971_s0, %s444_s25 }
  0x46   : > { %s160_s27 = scalar_lea.vmem [#allocation2], %s424_s17  ;;  %p870_p11 = pnand %p492_p7, %p36_p9 }
  0x47   : > { %s167_s28 = sshll.u32 %s160_s27, 4  ;;  %s874_s29 = scalar_lea.sflag [#allocation3], %s156_s11  ;;  %s868_s28 = int_to_ptr.vmem [resolvable:$true] %s167_s28 }
  0x48   : > { %s597_s30 = scalar_lea.hbm %s866_s26, 128  ;;  %p599_p0 = pneg %p870_p11 }
  0x49   : > { %p598_p12 = scmp.ne.s32.totalorder %s866_s26, %s597_s30  ;;  %s602_s6 = scalar_lea.hbm %s971_s0, 256 }
  0x4a   : > { %p603_p13 = scmp.lt.u32.totalorder %s866_s26, %s971_s0  ;;  %p604_p6 = scmp.lt.u32.totalorder %s602_s6, %s597_s30 }
  0x4b   : > { %p600_p1 = pnand %p599_p0, %p598_p12  ;;  %p606_p3 = scmp.lt.u32.totalorder %s597_s30, %s866_s26 }
  0x4c   : > { %p605_p10 = por %p604_p6, %p603_p13 }
  0x4d   : > { %p601_p2 = pneg %p600_p1 }
  0x4e   : > { %p607_p7 = por %p606_p3, %p605_p10 }
  0x50   : > { %p608_p9 = pnand %p607_p7, %p601_p2 }
  0x52   : > { %611 = shalt.err (!%p608_p9)
}
  0x53   : > { %s612_s11 = scalar_lea.vmem %s868_s28, 128  ;;  %s703_s21 = smov [#allocation2]  }
  0x54   : > { %p613_p12 = scmp.ne.s32.totalorder %s868_s28, %s612_s11  ;;  %s617_s24 = sshll.u32 %s703_s21, 4  ;;  %s618_s24 = int_to_ptr.vmem [resolvable:$false] %s617_s24 }
  0x55   : > { %s619_s27 = scalar_lea.vmem %s618_s24, 256  ;;  %p620_p4 = scmp.lt.s32.totalorder %s868_s28, %s618_s24 }
  0x56   : > { %p615_p1 = pnand %p613_p12, %p599_p0  ;;  %p621_p13 = scmp.lt.s32.totalorder %s619_s27, %s612_s11 }
  0x58   : > { %p616_p5 = pneg %p615_p1  ;;  %p622_p6 = por %p621_p13, %p620_p4 }
  0x5a   : > { %p623_p10 = pnand %p622_p6, %p616_p5 }
  0x5c   : > { %626 = shalt.err (!%p623_p10)
}
  0x5d   : > { %485 = dma.hbm_to_vmem [thread:$0]  (!%p870_p11), %s866_s26, 128, %s868_s28, %s874_s29, %s701_s7, %s701_s7, %s702_s8  }
  0x5e   : > { %179 = sbr.rel (%p769_p8) target bundleno = 353 (0x161), region = 32  ;;  %s908_s30 = sand.u32 (!%p769_p8), 1, %s689_s13  }
  0x5f   : > { %s428_s4 = sshll.u32 (!%p769_p8), %s908_s30, 3  ;;  %s182_s23 = scalar_lea.sflag (!%p769_p8), [#allocation3], %s908_s30 }
  0x60   : > { %s185_s6 = scalar_lea.vmem (!%p769_p8), [#allocation2], %s428_s4  ;;  %p985_p4 = scmp.ne.s32.totalorder (!%p769_p8), %s978_s18, 0 }
  0x65   : > { %672 = dma.done.wait (%p985_p4), %s182_s23, 128  }
  0x66   : > { %674 = vsyncadd (%p985_p4), %s182_s23, 4294967168  ;;  %p986_p5 = scmp.eq.s32.totalorder %s750_s16, 0 }
  0x68   : > { %676 = dma.done.wait (%p986_p5), [#allocation6], 528   ;;  %p987_p11 = pmov %p986_p5 }
  0x69   : > { %v704_v0 = vmov 0.0   ;;  %vm705_vm0 = vmmov 0   ;;  %v536_v1 = vld [vmem:[#allocation5] sm:$0xff]   ;;  %v537_v2 = vld [vmem:[#allocation5 + $0x8] sm:$0xff]   ;;  %v538_v3 = vld [vmem:[#allocation5 + $0x10] sm:$0xff]   ;;  %vm265_vm1 = vcmask 523264  }
  0x6a   : > { %678 = vsyncadd (%p987_p11), [#allocation6], 4294966768  ;;  %451 = vmatprep.subr.bf16.mxu0 %v704_v0  ;;  %459 = vmatprep.mubr.msk.bf16.mxu0 %vm705_vm0, %v704_v0  ;;  %v539_v4 = vld [vmem:[#allocation5 + $0x18] sm:$0xff]   ;;  %s431_s18 = sshll.u32 %s908_s30, 4  ;;  %v432_v6 = vld [vmem:[#allocation7] ss:$0 sm:$0xff] }
  0x6b   : > { %452 = vmatpush3.bf16.msra.mxu0 %v536_v1  ;;  %v540_v5 = vld [vmem:[%s185_s6] sm:$0xff]   ;;  %s215_s20 = scalar_lea.vmem [#allocation8], %s431_s18  ;;  %s445_s8 = sshll.u32 %s750_s16, 8  ;;  %vm310_vm2 = vcmask 261120  }
  0x6c   : > { %453 = vmatprep.subr.bf16.mxu0 %v704_v0  ;;  %s327_s7 = sshll.u32 %s215_s20, 4  ;;  %s927_s22 = scalar_lea.hbm %s974_s3, %s445_s8  ;;  %s922_s7 = int_to_ptr.vmem [resolvable:$true] %s327_s7 }
  0x6d   : > { %s314_s16 = scalar_lea.sflag [#allocation4], %s908_s30  ;;  %s627_s29 = scalar_lea.vmem %s922_s7, 256 }
  0x6e   : > { %p628_p8 = scmp.ne.s32.totalorder %s922_s7, %s627_s29  ;;  %p988_p0 = scmp.ne.s32.totalorder %s983_s9, 0 }
  0x6f   : > { %454 = vmatpush3.bf16.msra.mxu0 %v537_v2  ;;  %s706_s17 = smov [#allocation8]  }
  0x70   : > { %455 = vmatprep.subr.bf16.mxu0 %v704_v0  ;;  %p629_p2 = pnand %p628_p8, %p988_p0  ;;  %s631_s25 = sshll.u32 %s706_s17, 4  ;;  %s632_s25 = int_to_ptr.vmem [resolvable:$false] %s631_s25 }
  0x71   : > { %s633_s11 = scalar_lea.vmem %s632_s25, 512  ;;  %p634_p7 = scmp.lt.s32.totalorder %s922_s7, %s632_s25 }
  0x72   : > { %p630_p3 = pneg %p629_p2  ;;  %p635_p9 = scmp.lt.s32.totalorder %s633_s11, %s627_s29 }
  0x73   : > { %456 = vmatpush3.bf16.msra.mxu0 %v538_v3 }
  0x74   : > { %457 = vmatprep.subr.bf16.mxu0 %v704_v0  ;;  %p636_p12 = por %p635_p9, %p634_p7 }
  0x76   : > { %p637_p1 = pnand %p636_p12, %p630_p3 }
  0x77   : > { %458 = vmatpush3.bf16.msra.mxu0 %v539_v4 }
  0x7a   : > { %460 = vmatmul.mubr.msk.bf16.vlgmr.msra.gmra.mrb[0].mxu0 %vm265_vm1, %v540_v5 }
 0x14d   : > { %v303_v7 = vpop.f32.mrb[0].mxu0 }
 0x14e   : > { %v304_v8 = vadd.f32 %v432_v6, %v303_v7  ;;  %v461_v9 = vpop.f32.mrb[1].mxu0 }
 0x14f   : > { %v306_v10 = vpop.f32.mrb[2].mxu0 }
 0x150   : > { %311 = vst.msk [vmem:[%s215_s20] sm:$0xff] %vm310_vm2, %v304_v8  ;;  %v307_v11 = vadd.f32 %v432_v6, %v306_v10  ;;  %v462_v12 = vpop.f32.mrb[3].mxu0 }
 0x152   : > { %312 = vst.msk [vmem:[%s215_s20 + $0x8] sm:$0xff] %vm310_vm2, %v307_v11 }
 0x153   : > { %640 = shalt.err (!%p637_p1)
}
 0x154   : > { %s641_s21 = scalar_lea.hbm %s927_s22, 256  ;;  %s645_s4 = scalar_lea.hbm %s974_s3, 512 }
 0x155   : > { %p642_p13 = scmp.ne.s32.totalorder %s927_s22, %s641_s21  ;;  %p646_p4 = scmp.lt.u32.totalorder %s927_s22, %s974_s3 }
 0x156   : > { %p647_p5 = scmp.lt.u32.totalorder %s645_s4, %s641_s21  ;;  %p649_p8 = scmp.lt.u32.totalorder %s641_s21, %s927_s22 }
 0x157   : > { %p643_p6 = pnand %p642_p13, %p988_p0 }
 0x158   : > { %p648_p11 = por %p647_p5, %p646_p4 }
 0x159   : > { %p644_p10 = pneg %p643_p6 }
 0x15a   : > { %p650_p2 = por %p649_p8, %p648_p11 }
 0x15c   : > { %p651_p3 = pnand %p650_p2, %p644_p10 }
 0x15e   : > { %654 = shalt.err (!%p651_p3)
}
 0x15f   : > { %s707_s18 = smov 128   ;;  %s708_s20 = smov 8  }
 0x160   : > { %473 = dma.vmem_to_hbm [thread:$0]  (%p988_p0), %s922_s7, 256, %s927_s22, %s314_s16, %s707_s18, %s707_s18, %s708_s20  }
 0x161 PF: > { %s342_s8 = sand.u32 1, %s685_s12   ;;  %p989_p7 = scmp.ne.s32.totalorder %s979_s19, 0 }
 0x162   : > { %p990_p9 = scmp.ge.s32.totalorder %s697_s15, 2  ;;  %s343_s26 = scalar_lea.sflag [#allocation4], %s342_s8 }
 0x164   : > { %p487_p12 = pnand %p990_p9, %p989_p7 }
 0x166   : > { %680 = dma.done.wait (!%p487_p12), %s343_s26, 256  }
 0x167   : > { %682 = vsyncadd (!%p487_p12), %s343_s26, 4294967040  ;;  %p17_p1 = scmp.ge.s32.totalorder %s843_s5, 4   ;;  %s991_s12 = smov %s689_s13 }
 0x168   : > { %s992_s13 = smov %s693_s14  ;;  %s993_s14 = smov %s859_s10 }
 0x169   : > { %s994_s15 = smov %s843_s5  ;;  %19 = sbr.rel (!%p17_p1) target bundleno = 6 (0x6), region = 85 }
 0x170   :  { %348 = vsyncpa [#allocation3], 1 }
 0x171   :  { %350 = vsyncpa [#allocation3 + $0x1], 1 }
 0x172   :  { %351 = vsyncpa [#allocation6], 1 }
 0x173   :  { %352 = vsyncpa [#allocation4], 1 }
 0x174   :  { %354 = vsyncpa [#allocation4 + $0x1], 1 }

// kernel: vit_forward.7
= control target key start
LH: loop header
LB: loop body
LE: loop exit
PB: predicated region body
PF: predicated region fallthrough
CT: control target
= control target key end

     0   :  { %10 = vsyncpa [#allocation3], 0  ;;  %s490_s0 = inlined_call_operand.hbm [shape: f32[2,32], index: 0, kind: input, shape index: {}]   ;;  %s491_s1 = inlined_call_operand.hbm [shape: f32[1,32], index: 1, kind: input, shape index: {}]   ;;  %s492_s2 = inlined_call_operand.hbm [shape: f32[1,32], index: 2, kind: input, shape index: {}]   ;;  %s493_s3 = inlined_call_operand.hbm [shape: bf16[32,128], index: 3, kind: input, shape index: {}]   ;;  %s494_s4 = inlined_call_operand.hbm [shape: f32[1,128], index: 4, kind: input, shape index: {}]   ;;  %s495_s5 = inlined_call_operand.hbm [shape: f32[2,128], index: 5, kind: output, shape index: {}]  }
   0x1   :  { %11 = vsyncpa [#allocation6], 0 }
   0x2   :  { %12 = vsyncpa [#allocation9], 0 }
   0x3   :  { %13 = vsyncpa [#allocation4], 0  ;;  %s371_s18 = smov [#allocation5]   ;;  %s372_s20 = smov [#allocation8]  }
   0x4   :  { %s30_s19 = sshll.u32 %s371_s18, 4  ;;  %s49_s21 = sshll.u32 %s372_s20, 4  ;;  %s31_s19 = int_to_ptr.vmem [resolvable:$true] %s30_s19  ;;  %s411_s21 = int_to_ptr.vmem [resolvable:$true] %s49_s21 }
   0x5   :  { %s231_s24 = scalar_lea.hbm %s491_s1, 16 }
   0x6   :  { %p232_p0 = scmp.ne.s32.totalorder %s491_s1, %s231_s24  ;;  %p235_p1 = scmp.lt.u32.totalorder %s231_s24, %s491_s1 }
   0x8   :  { %p237_p2 = pnand %p235_p1, %p232_p0 }
   0xa   :  { %240 = shalt.err (!%p237_p2)
}
   0xb   :  { %s241_s29 = scalar_lea.vmem %s31_s19, 16  ;;  %s245_s30 = scalar_lea.vmem %s31_s19, 32 }
   0xc   :  { %p242_p3 = scmp.ne.s32.totalorder %s31_s19, %s241_s29  ;;  %p246_p4 = scmp.lt.s32.totalorder %s31_s19, %s31_s19 }
   0xd   :  { %p247_p5 = scmp.lt.s32.totalorder %s245_s30, %s241_s29 }
   0xf   :  { %p248_p6 = por %p247_p5, %p246_p4 }
  0x11   :  { %p249_p7 = pnand %p248_p6, %p242_p3 }
  0x13   :  { %252 = shalt.err (!%p249_p7)
}
  0x14   :  { %33 = dma.hbm_to_vmem [thread:$0]  %s491_s1, 16, %s31_s19, [#allocation6]  }
  0x15   :  { %s253_s10 = scalar_lea.hbm %s493_s3, 256 }
  0x16   :  { %p254_p8 = scmp.ne.s32.totalorder %s493_s3, %s253_s10  ;;  %p257_p9 = scmp.lt.u32.totalorder %s253_s10, %s493_s3 }
  0x18   :  { %p259_p10 = pnand %p257_p9, %p254_p8 }
  0x1a   :  { %262 = shalt.err (!%p259_p10)
}
  0x1b   :  { %s263_s15 = scalar_lea.vmem %s411_s21, 256  ;;  %p268_p12 = scmp.lt.s32.totalorder %s411_s21, %s411_s21 }
  0x1c   :  { %p264_p11 = scmp.ne.s32.totalorder %s411_s21, %s263_s15  ;;  %p269_p13 = scmp.lt.s32.totalorder %s263_s15, %s263_s15 }
  0x1e   :  { %p270_p0 = por %p269_p13, %p268_p12 }
  0x20   :  { %p271_p1 = pnand %p270_p0, %p264_p11 }
  0x22   :  { %274 = shalt.err (!%p271_p1)
}
  0x23   :  { %s373_s1 = smov 64   ;;  %s374_s16 = smov 4  }
  0x24   :  { %55 = dma.hbm_to_vmem [thread:$0]  %s493_s3, 256, %s411_s21, [#allocation9], %s373_s1, %s373_s1, %s374_s16  }
  0x25   :  { %s375_s19 = smov [#allocation2]   ;;  %s376_s22 = smov [#allocation7]  }
  0x26   :  { %s20_s20 = sshll.u32 %s375_s19, 4  ;;  %s40_s23 = sshll.u32 %s376_s22, 4  ;;  %s21_s20 = int_to_ptr.vmem [resolvable:$true] %s20_s20  ;;  %s41_s23 = int_to_ptr.vmem [resolvable:$true] %s40_s23 }
  0x27   :  { %s275_s26 = scalar_lea.hbm %s490_s0, 32 }
  0x28   :  { %p276_p2 = scmp.ne.s32.totalorder %s490_s0, %s275_s26  ;;  %p279_p3 = scmp.lt.u32.totalorder %s275_s26, %s490_s0 }
  0x2a   :  { %p281_p4 = pnand %p279_p3, %p276_p2 }
  0x2c   :  { %284 = shalt.err (!%p281_p4)
}
  0x2d   :  { %s285_s3 = scalar_lea.vmem %s21_s20, 32  ;;  %p290_p6 = scmp.lt.s32.totalorder %s21_s20, %s21_s20 }
  0x2e   :  { %p286_p5 = scmp.ne.s32.totalorder %s21_s20, %s285_s3  ;;  %p291_p7 = scmp.lt.s32.totalorder %s285_s3, %s285_s3 }
  0x30   :  { %p292_p8 = por %p291_p7, %p290_p6 }
  0x32   :  { %p293_p9 = pnand %p292_p8, %p286_p5 }
  0x34   :  { %296 = shalt.err (!%p293_p9)
}
  0x35   :  { %23 = dma.hbm_to_vmem [thread:$0]  %s490_s0, 32, %s21_s20, [#allocation3]  }
  0x36   :  { %s297_s9 = scalar_lea.hbm %s492_s2, 16 }
  0x37   :  { %p298_p10 = scmp.ne.s32.totalorder %s492_s2, %s297_s9  ;;  %p301_p11 = scmp.lt.u32.totalorder %s297_s9, %s492_s2 }
  0x39   :  { %p303_p12 = pnand %p301_p11, %p298_p10 }
  0x3b   :  { %306 = shalt.err (!%p303_p12)
}
  0x3c   :  { %s307_s14 = scalar_lea.vmem %s41_s23, 16  ;;  %s311_s15 = scalar_lea.vmem %s41_s23, 32 }
  0x3d   :  { %p308_p13 = scmp.ne.s32.totalorder %s41_s23, %s307_s14  ;;  %p312_p0 = scmp.lt.s32.totalorder %s41_s23, %s41_s23 }
  0x3e   :  { %p313_p1 = scmp.lt.s32.totalorder %s311_s15, %s307_s14 }
  0x40   :  { %p314_p2 = por %p313_p1, %p312_p0 }
  0x42   :  { %p315_p3 = pnand %p314_p2, %p308_p13 }
  0x44   :  { %318 = shalt.err (!%p315_p3)
}
  0x45   :  { %43 = dma.hbm_to_vmem [thread:$0]  %s492_s2, 16, %s41_s23, [#allocation6]  }
  0x46   :  { %s377_s16 = smov [#allocation10]   ;;  %s319_s20 = scalar_lea.hbm %s494_s4, 16 }
  0x47   :  { %s62_s17 = sshll.u32 %s377_s16, 4  ;;  %p320_p4 = scmp.ne.s32.totalorder %s494_s4, %s319_s20  ;;  %s63_s17 = int_to_ptr.vmem [resolvable:$true] %s62_s17 }
  0x48   :  { %p323_p5 = scmp.lt.u32.totalorder %s319_s20, %s494_s4 }
  0x4a   :  { %p325_p6 = pnand %p323_p5, %p320_p4 }
  0x4c   :  { %328 = shalt.err (!%p325_p6)
}
  0x4d   :  { %s329_s27 = scalar_lea.vmem %s63_s17, 16  ;;  %s333_s2 = scalar_lea.vmem %s63_s17, 32 }
  0x4e   :  { %p330_p7 = scmp.ne.s32.totalorder %s63_s17, %s329_s27  ;;  %p334_p8 = scmp.lt.s32.totalorder %s63_s17, %s63_s17 }
  0x4f   :  { %p335_p9 = scmp.lt.s32.totalorder %s333_s2, %s329_s27 }
  0x51   :  { %p336_p10 = por %p335_p9, %p334_p8 }
  0x53   :  { %p337_p11 = pnand %p336_p10, %p330_p7 }
  0x55   :  { %340 = shalt.err (!%p337_p11)
}
  0x56   :  { %65 = dma.hbm_to_vmem [thread:$0]  %s494_s4, 16, %s63_s17, [#allocation9]  }
  0x57   :  { %363 = dma.done.wait [#allocation3], 32  }
  0x58   :  { %364 = vsyncadd [#allocation3], 4294967264 }
  0x59   :  { %365 = dma.done.wait [#allocation6], 32  }
  0x5a   :  { %366 = vsyncadd [#allocation6], 4294967264 }
  0x5b   :  { %367 = dma.done.wait [#allocation9], 272  }
  0x5c   :  { %368 = vsyncadd [#allocation9], 4294967024  ;;  %vm85_vm0 = vcmask 254976   ;;  %v82_v0 = vld [vmem:[#allocation2] sm:$0x3]  ;;  %v227_v7 = vld [vmem:[#allocation8] sm:$0xff]  }
  0x5d   :  { %v86_v1 = vsel %vm85_vm0, %v82_v0, 0.0  ;;  %v378_v8 = vmov 0.0   ;;  %v228_v9 = vld [vmem:[#allocation8 + $0x8] sm:$0xff]   ;;  %vm379_vm1 = vmmov 0   ;;  %v200_v14 = vld [vmem:[#allocation5] ss:$0 sm:$0xff] }
  0x5e   :  { %87 = vadd.xlane.f32.xlu0 %v86_v1  ;;  %209 = vmatprep.subr.bf16.mxu0 %v378_v8  ;;  %v201_v16 = vld [vmem:[#allocation7] ss:$0 sm:$0xff]  ;;  %vm138_vm2 = vcmask 261120   ;;  %v202_v20 = vld [vmem:[#allocation10] ss:$0 sm:$0xff]  ;;  %s380_s4 = smov [#allocation11]  }
  0x5f   :  { %210 = vmatpush3.bf16.msra.mxu0 %v227_v7  ;;  %213 = vmatprep.mubr.msk.bf16.mxu0 %vm379_vm1, %v378_v8  ;;  %s189_s29 = sshll.u32 %s380_s4, 4  ;;  %s190_s29 = int_to_ptr.vmem [resolvable:$true] %s189_s29 }
  0x60   :  { %211 = vmatprep.subr.bf16.mxu0 %v378_v8  ;;  %s341_s30 = scalar_lea.vmem %s190_s29, 32  ;;  %p346_p13 = scmp.lt.s32.totalorder %s190_s29, %s190_s29 }
  0x61   :  { %p342_p12 = scmp.ne.s32.totalorder %s190_s29, %s341_s30  ;;  %p347_p0 = scmp.lt.s32.totalorder %s341_s30, %s341_s30 }
  0x63   :  { %212 = vmatpush3.bf16.msra.mxu0 %v228_v9  ;;  %p348_p1 = por %p347_p0, %p346_p13 }
  0x65   :  { %p349_p2 = pnand %p348_p1, %p342_p12 }
  0xeb   :  { %v88_v2 = vpop.xlane.xlu0 %87 }
  0xec   :  { %v90_v3 = vmul.f32 0.03125, %v88_v2 }
  0xee   :  { %v91_v4 = vsub.f32 %v82_v0, %v90_v3 }
  0xf0   :  { %v92_v5 = vmul.f32 %v91_v4, %v91_v4 }
  0xf2   :  { %v93_v6 = vsel %vm85_vm0, %v92_v5, 0.0 }
  0xf3   :  { %94 = vadd.xlane.f32.xlu0 %v93_v6 }
 0x180   :  { %v95_v10 = vpop.xlane.xlu0 %94 }
 0x181   :  { %v96_v11 = vmul.f32 0.03125, %v95_v10 }
 0x183   :  { %v97_v12 = vadd.f32 1e-05, %v96_v11 }
 0x185   :  { %229 = vrsqrt.f32 %v97_v12 }
 0x18f   :  { %v230_v13 = vpop.eup %229 }
 0x190   :  { %v99_v15 = vmul.f32 %v230_v13, %v91_v4 }
 0x192   :  { %v106_v17 = vmul.f32 %v200_v14, %v99_v15 }
 0x194   :  { %v113_v18 = vadd.f32 %v201_v16, %v106_v17 }
 0x196   :  { %v114_v19 = vpack.c.bf16 %v113_v18, %v113_v18 }
 0x198   :  { %214 = vmatmul.mubr.msk.bf16.vlgmr.msra.gmra.mrb[0].mxu0 %vm138_vm2, %v114_v19 }
 0x26b   :  { %v176_v21 = vpop.f32.mrb[0].mxu0 }
 0x26c   :  { %v177_v22 = vadd.f32 %v202_v20, %v176_v21  ;;  %v215_v23 = vpop.f32.mrb[1].mxu0 }
 0x26d   :  { %v179_v24 = vpop.f32.mrb[2].mxu0 }
 0x26e   :  { %182 = vst [vmem:[#allocation11] sm:$0x3] %v177_v22  ;;  %v216_v25 = vpop.f32.mrb[3].mxu0 }
 0x26f   :  { %352 = shalt.err (!%p349_p2)
}
 0x270   :  { %s353_s6 = scalar_lea.hbm %s495_s5, 32 }
 0x271   :  { %p354_p3 = scmp.ne.s32.totalorder %s495_s5, %s353_s6  ;;  %p357_p4 = scmp.lt.u32.totalorder %s353_s6, %s495_s5 }
 0x273   :  { %p359_p5 = pnand %p357_p4, %p354_p3 }
 0x275   :  { %362 = shalt.err (!%p359_p5)
}
 0x276   :  { %192 = dma.vmem_to_hbm [thread:$0]  %s190_s29, 32, %s495_s5, [#allocation4]  }
 0x277   :  { %369 = dma.done.wait [#allocation4], 32  }
 0x278   :  { %370 = vsyncadd [#allocation4], 4294967264 }
 0x279   :  { %196 = vsyncpa [#allocation3], 1 }
 0x27a   :  { %197 = vsyncpa [#allocation6], 1 }
 0x27b   :  { %198 = vsyncpa [#allocation9], 1 }
 0x27c   :  { %199 = vsyncpa [#allocation4], 1 }

// kernel: vit_forward.5
= control target key start
LH: loop header
LB: loop body
LE: loop exit
PB: predicated region body
PF: predicated region fallthrough
CT: control target
= control target key end

     0   :  { %s4011_s0 = inlined_call_operand.hbm [shape: f32[2,17,32], index: 0, kind: input, shape index: {}]   ;;  %s4012_s1 = inlined_call_operand.hbm [shape: f32[1,32], index: 1, kind: input, shape index: {}]   ;;  %s4013_s2 = inlined_call_operand.hbm [shape: f32[1,32], index: 2, kind: input, shape index: {}]   ;;  %s4014_s3 = inlined_call_operand.hbm [shape: bf16[32,96], index: 3, kind: input, shape index: {}]   ;;  %s4015_s4 = inlined_call_operand.hbm [shape: f32[1,96], index: 4, kind: input, shape index: {}]   ;;  %s4016_s5 = inlined_call_operand.hbm [shape: bf16[4,8,32], index: 5, kind: input, shape index: {}]   ;;  %s4017_s6 = inlined_call_operand.hbm [shape: f32[1,32], index: 6, kind: input, shape index: {}]   ;;  %s4018_s7 = inlined_call_operand.hbm [shape: f32[1,32], index: 7, kind: input, shape index: {}]   ;;  %s4019_s8 = inlined_call_operand.hbm [shape: f32[1,32], index: 8, kind: input, shape index: {}]   ;;  %s4020_s9 = inlined_call_operand.hbm [shape: bf16[32,64], index: 9, kind: input, shape index: {}]   ;;  %s4021_s10 = inlined_call_operand.hbm [shape: f32[1,64], index: 10, kind: input, shape index: {}]   ;;  %s4022_s11 = inlined_call_operand.hbm [shape: bf16[64,32], index: 11, kind: input, shape index: {}]   ;;  %s4023_s12 = inlined_call_operand.hbm [shape: f32[1,32], index: 12, kind: input, shape index: {}]   ;;  %s4024_s13 = inlined_call_operand.hbm [shape: f32[2,17,32], index: 13, kind: output, shape index: {}]  }
   0x1   :  { %4034 = sst [smem:[#allocation34_spill]] %s4011_s0 }
   0x2   :  { %4035 = sst [smem:[#allocation35_spill]] %s4012_s1 }
   0x3   :  { %4036 = sst [smem:[#allocation36_spill]] %s4013_s2 }
   0x4   :  { %4037 = sst [smem:[#allocation37_spill]] %s4014_s3 }
   0x5   :  { %4038 = sst [smem:[#allocation38_spill]] %s4015_s4 }
   0x6   :  { %4039 = sst [smem:[#allocation39_spill]] %s4024_s13 }
   0x7   :  { %18 = vsyncpa [#allocation3], 0 }
   0x8   :  { %20 = vsyncpa [#allocation3 + $0x1], 0 }
   0x9   :  { %21 = vsyncpa [#allocation6], 0 }
   0xa   :  { %22 = vsyncpa [#allocation9], 0 }
   0xb   :  { %23 = vsyncpa [#allocation12], 0 }
   0xc   :  { %24 = vsyncpa [#allocation15], 0 }
   0xd   :  { %25 = vsyncpa [#allocation18], 0 }
   0xe   :  { %26 = vsyncpa [#allocation21], 0 }
   0xf   :  { %27 = vsyncpa [#allocation4], 0 }
  0x10   :  { %29 = vsyncpa [#allocation4 + $0x1], 0  ;;  %s3296_s25 = smov 0   ;;  %s3298_s26 = smov 0  }
  0x11   :  { %s3300_s27 = smov 0   ;;  %s3302_s28 = smov 0  }
  0x12 LB: > { %s3200_s29 = smov [#allocation5]   ;;  %s3317_s14 = sadd.s32 4294967295, %s3198_s28   ;;  %s3198_s28 = sphi %s3302_s28, %s4078_s28   ;;  %s3194_s27 = sphi %s3300_s27, %s4077_s27   ;;  %s3190_s26 = sphi %s3298_s26, %s4076_s26   ;;  %s3186_s25 = sphi %s3296_s25, %s4075_s25  }
  0x13   : > { %s357_s30 = sshll.u32 %s3200_s29, 4  ;;  %4040 = sst [smem:[#allocation32_spill]] %s3317_s14  ;;  %s3322_s30 = int_to_ptr.vmem [resolvable:$true] %s357_s30 }
  0x14   : > { %p2222_p0 = scmp.ge.s32.totalorder %s3198_s28, 1  ;;  %p4031_p1 = scmp.eq.s32.totalorder %s3317_s14, 0 }
  0x15   : > { %p344_p2 = scmp.lt.s32.totalorder %s3198_s28, 3  ;;  %s3201_s16 = smov [#allocation8]  }
  0x16   : > { %s378_s17 = sshll.u32 %s3201_s16, 4  ;;  %s3202_s19 = smov [#allocation11]   ;;  %s3331_s17 = int_to_ptr.vmem [resolvable:$true] %s378_s17 }
  0x17   : > { %p3324_p3 = pnand %p2222_p0, %p344_p2  ;;  %s402_s20 = sshll.u32 %s3202_s19, 4  ;;  %s3339_s20 = int_to_ptr.vmem [resolvable:$true] %s402_s20 }
  0x18   : > { %s4044_s1 = sld [smem:[#allocation35_spill]] }
  0x19   : > { %s4041_s15 = scalar_select %p3324_p3, 1, 0 }
  0x1a   : > { %p2541_p5 = pneg %p3324_p3 }
  0x1b   : > { %4042 = sst [smem:[#allocation33_spill]] %s4041_s15 }
  0x1c   : > { %p3335_p6 = pnand %p2541_p5, %p4031_p1 }
  0x1e   : > { %s2742_s23 = scalar_lea.hbm %s4044_s1, 16  ;;  %p3349_p8 = pneg %p3335_p6 }
  0x1f   : > { %p2743_p7 = scmp.ne.s32.totalorder %s4044_s1, %s2742_s23  ;;  %p2749_p11 = scmp.lt.u32.totalorder %s2742_s23, %s4044_s1 }
  0x21   : > { %p2745_p9 = pnand %p3349_p8, %p2743_p7 }
  0x23   : > { %p2746_p10 = pneg %p2745_p9 }
  0x25   : > { %p2751_p12 = pnand %p2749_p11, %p2746_p10 }
  0x27   : > { %2754 = shalt.err (!%p2751_p12)
}
  0x28   : > { %s2755_s21 = scalar_lea.vmem %s3322_s30, 16  ;;  %s2762_s22 = scalar_lea.vmem %s3322_s30, 32 }
  0x29   : > { %p2756_p13 = scmp.ne.s32.totalorder %s3322_s30, %s2755_s21  ;;  %p2763_p5 = scmp.lt.s32.totalorder %s3322_s30, %s3322_s30 }
  0x2a   : > { %p2764_p7 = scmp.lt.s32.totalorder %s2762_s22, %s2755_s21 }
  0x2b   : > { %p2758_p0 = pnand %p2756_p13, %p3349_p8 }
  0x2c   : > { %p2765_p9 = por %p2764_p7, %p2763_p5 }
  0x2d   : > { %p2759_p2 = pneg %p2758_p0 }
  0x2f   : > { %p2766_p4 = pnand %p2765_p9, %p2759_p2 }
  0x31   : > { %2769 = shalt.err (!%p2766_p4)
}
  0x32   : > { %2544 = dma.hbm_to_vmem [thread:$0]  (!%p3335_p6), %s4044_s1, 16, %s3322_s30, [#allocation6]  }
  0x33   : > { %s4046_s3 = sld [smem:[#allocation37_spill]] }
  0x39   : > { %s2770_s19 = scalar_lea.hbm %s4046_s3, 256 }
  0x3a   : > { %p2771_p10 = scmp.ne.s32.totalorder %s4046_s3, %s2770_s19  ;;  %p2777_p4 = scmp.lt.u32.totalorder %s2770_s19, %s4046_s3 }
  0x3c   : > { %p2773_p11 = pnand %p2771_p10, %p3349_p8 }
  0x3e   : > { %p2774_p12 = pneg %p2773_p11 }
  0x40   : > { %p2779_p13 = pnand %p2777_p4, %p2774_p12 }
  0x42   : > { %2782 = shalt.err (!%p2779_p13)
}
  0x43   : > { %s2783_s30 = scalar_lea.vmem %s3331_s17, 256  ;;  %p2791_p7 = scmp.lt.s32.totalorder %s3331_s17, %s3331_s17 }
  0x44   : > { %p2784_p0 = scmp.ne.s32.totalorder %s3331_s17, %s2783_s30  ;;  %p2792_p9 = scmp.lt.s32.totalorder %s2783_s30, %s2783_s30 }
  0x46   : > { %p2786_p2 = pnand %p2784_p0, %p3349_p8  ;;  %p2793_p10 = por %p2792_p9, %p2791_p7 }
  0x48   : > { %p2787_p5 = pneg %p2786_p2 }
  0x4a   : > { %p2794_p11 = pnand %p2793_p10, %p2787_p5 }
  0x4c   : > { %2797 = shalt.err (!%p2794_p11)
}
  0x4d   : > { %s3203_s0 = smov 64   ;;  %s3204_s15 = smov 4  }
  0x4e   : > { %2550 = dma.hbm_to_vmem [thread:$0]  (!%p3335_p6), %s4046_s3, 256, %s3331_s17, [#allocation9], %s3203_s0, %s3203_s0, %s3204_s15  }
  0x4f   : > { %s2798_s19 = scalar_lea.hbm %s4016_s5, 256 }
  0x50   : > { %p2799_p12 = scmp.ne.s32.totalorder %s4016_s5, %s2798_s19  ;;  %p2805_p0 = scmp.lt.u32.totalorder %s2798_s19, %s4016_s5 }
  0x52   : > { %p2801_p4 = pnand %p2799_p12, %p3349_p8 }
  0x54   : > { %p2802_p13 = pneg %p2801_p4 }
  0x56   : > { %p2807_p2 = pnand %p2805_p0, %p2802_p13 }
  0x58   : > { %2810 = shalt.err (!%p2807_p2)
}
  0x59   : > { %s2811_s17 = scalar_lea.vmem %s3339_s20, 256  ;;  %p2819_p10 = scmp.lt.s32.totalorder %s3339_s20, %s3339_s20 }
  0x5a   : > { %p2812_p5 = scmp.ne.s32.totalorder %s3339_s20, %s2811_s17  ;;  %p2820_p11 = scmp.lt.s32.totalorder %s2811_s17, %s2811_s17 }
  0x5c   : > { %p2814_p7 = pnand %p2812_p5, %p3349_p8  ;;  %p2821_p12 = por %p2820_p11, %p2819_p10 }
  0x5e   : > { %p2815_p9 = pneg %p2814_p7 }
  0x60   : > { %p2822_p4 = pnand %p2821_p12, %p2815_p9 }
  0x62   : > { %2825 = shalt.err (!%p2822_p4)
}
  0x63   : > { %2556 = dma.hbm_to_vmem [thread:$0]  (!%p3335_p6), %s4016_s5, 256, %s3339_s20, [#allocation12], %s3203_s0, %s3203_s0, %s3204_s15  }
  0x64   : > { %s3205_s23 = smov [#allocation14]   ;;  %s3206_s29 = smov [#allocation17]  }
  0x65   : > { %s427_s24 = sshll.u32 %s3205_s23, 4  ;;  %s448_s19 = sshll.u32 %s3206_s29, 4  ;;  %s428_s24 = int_to_ptr.vmem [resolvable:$true] %s427_s24  ;;  %s449_s19 = int_to_ptr.vmem [resolvable:$true] %s448_s19 }
  0x66   : > { %s2826_s30 = scalar_lea.hbm %s4018_s7, 16 }
  0x67   : > { %p2827_p13 = scmp.ne.s32.totalorder %s4018_s7, %s2826_s30  ;;  %p2833_p5 = scmp.lt.u32.totalorder %s2826_s30, %s4018_s7 }
  0x69   : > { %p2829_p0 = pnand %p2827_p13, %p3349_p8 }
  0x6b   : > { %p2830_p2 = pneg %p2829_p0 }
  0x6d   : > { %p2835_p7 = pnand %p2833_p5, %p2830_p2 }
  0x6f   : > { %2838 = shalt.err (!%p2835_p7)
}
  0x70   : > { %s2839_s20 = scalar_lea.vmem %s428_s24, 16  ;;  %s2846_s13 = scalar_lea.vmem %s428_s24, 32 }
  0x71   : > { %p2840_p9 = scmp.ne.s32.totalorder %s428_s24, %s2839_s20  ;;  %p2847_p12 = scmp.lt.s32.totalorder %s428_s24, %s428_s24 }
  0x72   : > { %p2848_p4 = scmp.lt.s32.totalorder %s2846_s13, %s2839_s20 }
  0x73   : > { %p2842_p10 = pnand %p2840_p9, %p3349_p8 }
  0x74   : > { %p2849_p1 = por %p2848_p4, %p2847_p12 }
  0x75   : > { %p2843_p11 = pneg %p2842_p10 }
  0x77   : > { %p2850_p3 = pnand %p2849_p1, %p2843_p11 }
  0x79   : > { %2853 = shalt.err (!%p2850_p3)
}
  0x7a   : > { %2562 = dma.hbm_to_vmem [thread:$0]  (!%p3335_p6), %s4018_s7, 16, %s428_s24, [#allocation15]  }
  0x7b   : > { %s2854_s21 = scalar_lea.hbm %s4020_s9, 256 }
  0x7c   : > { %p2855_p13 = scmp.ne.s32.totalorder %s4020_s9, %s2854_s21  ;;  %p2861_p3 = scmp.lt.u32.totalorder %s2854_s21, %s4020_s9 }
  0x7e   : > { %p2857_p0 = pnand %p2855_p13, %p3349_p8 }
  0x80   : > { %p2858_p1 = pneg %p2857_p0 }
  0x82   : > { %p2863_p2 = pnand %p2861_p3, %p2858_p1 }
  0x84   : > { %2866 = shalt.err (!%p2863_p2)
}
  0x85   : > { %s2867_s20 = scalar_lea.vmem %s449_s19, 256  ;;  %p2875_p10 = scmp.lt.s32.totalorder %s449_s19, %s449_s19 }
  0x86   : > { %p2868_p5 = scmp.ne.s32.totalorder %s449_s19, %s2867_s20  ;;  %p2876_p11 = scmp.lt.s32.totalorder %s2867_s20, %s2867_s20 }
  0x88   : > { %p2870_p7 = pnand %p2868_p5, %p3349_p8  ;;  %p2877_p12 = por %p2876_p11, %p2875_p10 }
  0x8a   : > { %p2871_p9 = pneg %p2870_p7 }
  0x8c   : > { %p2878_p4 = pnand %p2877_p12, %p2871_p9 }
  0x8e   : > { %2881 = shalt.err (!%p2878_p4)
}
  0x8f   : > { %2568 = dma.hbm_to_vmem [thread:$0]  (!%p3335_p6), %s4020_s9, 256, %s449_s19, [#allocation18], %s3203_s0, %s3203_s0, %s3204_s15  }
  0x90   : > { %s3207_s3 = smov [#allocation20]   ;;  %s3208_s14 = smov [#allocation7]  }
  0x91   : > { %s472_s23 = sshll.u32 %s3207_s3, 4  ;;  %s368_s29 = sshll.u32 %s3208_s14, 4  ;;  %s473_s23 = int_to_ptr.vmem [resolvable:$true] %s472_s23  ;;  %s369_s29 = int_to_ptr.vmem [resolvable:$true] %s368_s29 }
  0x92   : > { %s2882_s30 = scalar_lea.hbm %s4022_s11, 512 }
  0x93   : > { %p2883_p13 = scmp.ne.s32.totalorder %s4022_s11, %s2882_s30  ;;  %p2889_p3 = scmp.lt.u32.totalorder %s2882_s30, %s4022_s11 }
  0x95   : > { %p2885_p0 = pnand %p2883_p13, %p3349_p8 }
  0x97   : > { %p2886_p1 = pneg %p2885_p0 }
  0x99   : > { %p2891_p2 = pnand %p2889_p3, %p2886_p1 }
  0x9b   : > { %2894 = shalt.err (!%p2891_p2)
}
  0x9c   : > { %s2895_s19 = scalar_lea.vmem %s473_s23, 512  ;;  %p2903_p10 = scmp.lt.s32.totalorder %s473_s23, %s473_s23 }
  0x9d   : > { %p2896_p5 = scmp.ne.s32.totalorder %s473_s23, %s2895_s19  ;;  %p2904_p11 = scmp.lt.s32.totalorder %s2895_s19, %s2895_s19 }
  0x9f   : > { %p2898_p7 = pnand %p2896_p5, %p3349_p8  ;;  %p2905_p12 = por %p2904_p11, %p2903_p10 }
  0xa1   : > { %p2899_p9 = pneg %p2898_p7 }
  0xa3   : > { %p2906_p4 = pnand %p2905_p12, %p2899_p9 }
  0xa5   : > { %2909 = shalt.err (!%p2906_p4)
}
  0xa6   : > { %2574 = dma.hbm_to_vmem [thread:$0]  (!%p3335_p6), %s4022_s11, 512, %s473_s23, [#allocation21], %s3203_s0, %s3203_s0, %s3204_s15  }
  0xa7   : > { %s4047_s2 = sld [smem:[#allocation36_spill]] }
  0xad   : > { %s2910_s22 = scalar_lea.hbm %s4047_s2, 16 }
  0xae   : > { %p2911_p13 = scmp.ne.s32.totalorder %s4047_s2, %s2910_s22  ;;  %p2917_p3 = scmp.lt.u32.totalorder %s2910_s22, %s4047_s2 }
  0xb0   : > { %p2913_p0 = pnand %p2911_p13, %p3349_p8 }
  0xb2   : > { %p2914_p1 = pneg %p2913_p0 }
  0xb4   : > { %p2919_p2 = pnand %p2917_p3, %p2914_p1 }
  0xb6   : > { %2922 = shalt.err (!%p2919_p2)
}
  0xb7   : > { %s2923_s24 = scalar_lea.vmem %s369_s29, 16  ;;  %s2930_s0 = scalar_lea.vmem %s369_s29, 32 }
  0xb8   : > { %p2924_p5 = scmp.ne.s32.totalorder %s369_s29, %s2923_s24  ;;  %p2931_p10 = scmp.lt.s32.totalorder %s369_s29, %s369_s29 }
  0xb9   : > { %p2932_p11 = scmp.lt.s32.totalorder %s2930_s0, %s2923_s24 }
  0xba   : > { %p2926_p7 = pnand %p2924_p5, %p3349_p8 }
  0xbb   : > { %p2933_p12 = por %p2932_p11, %p2931_p10 }
  0xbc   : > { %p2927_p9 = pneg %p2926_p7 }
  0xbe   : > { %p2934_p4 = pnand %p2933_p12, %p2927_p9 }
  0xc0   : > { %2937 = shalt.err (!%p2934_p4)
}
  0xc1   : > { %2547 = dma.hbm_to_vmem [thread:$0]  (!%p3335_p6), %s4047_s2, 16, %s369_s29, [#allocation6]  }
  0xc2   : > { %s3209_s19 = smov [#allocation10]   ;;  %s3210_s3 = smov [#allocation13]  }
  0xc3   : > { %s392_s13 = sshll.u32 %s3209_s19, 4  ;;  %s416_s14 = sshll.u32 %s3210_s3, 4  ;;  %s393_s13 = int_to_ptr.vmem [resolvable:$true] %s392_s13  ;;  %s417_s14 = int_to_ptr.vmem [resolvable:$true] %s416_s14 }
  0xc4   : > { %s4048_s4 = sld [smem:[#allocation38_spill]] }
  0xca   : > { %s2938_s30 = scalar_lea.hbm %s4048_s4, 16 }
  0xcb   : > { %p2939_p13 = scmp.ne.s32.totalorder %s4048_s4, %s2938_s30  ;;  %p2945_p3 = scmp.lt.u32.totalorder %s2938_s30, %s4048_s4 }
  0xcd   : > { %p2941_p0 = pnand %p2939_p13, %p3349_p8 }
  0xcf   : > { %p2942_p1 = pneg %p2941_p0 }
  0xd1   : > { %p2947_p2 = pnand %p2945_p3, %p2942_p1 }
  0xd3   : > { %2950 = shalt.err (!%p2947_p2)
}
  0xd4   : > { %s2951_s29 = scalar_lea.vmem %s393_s13, 16  ;;  %s2958_s0 = scalar_lea.vmem %s393_s13, 32 }
  0xd5   : > { %p2952_p5 = scmp.ne.s32.totalorder %s393_s13, %s2951_s29  ;;  %p2959_p10 = scmp.lt.s32.totalorder %s393_s13, %s393_s13 }
  0xd6   : > { %p2960_p11 = scmp.lt.s32.totalorder %s2958_s0, %s2951_s29 }
  0xd7   : > { %p2954_p7 = pnand %p2952_p5, %p3349_p8 }
  0xd8   : > { %p2961_p12 = por %p2960_p11, %p2959_p10 }
  0xd9   : > { %p2955_p9 = pneg %p2954_p7 }
  0xdb   : > { %p2962_p4 = pnand %p2961_p12, %p2955_p9 }
  0xdd   : > { %2965 = shalt.err (!%p2962_p4)
}
  0xde   : > { %2553 = dma.hbm_to_vmem [thread:$0]  (!%p3335_p6), %s4048_s4, 16, %s393_s13, [#allocation9]  }
  0xdf   : > { %s2966_s21 = scalar_lea.hbm %s4017_s6, 16 }
  0xe0   : > { %p2967_p13 = scmp.ne.s32.totalorder %s4017_s6, %s2966_s21  ;;  %p2973_p3 = scmp.lt.u32.totalorder %s2966_s21, %s4017_s6 }
  0xe2   : > { %p2969_p0 = pnand %p2967_p13, %p3349_p8 }
  0xe4   : > { %p2970_p1 = pneg %p2969_p0 }
  0xe6   : > { %p2975_p2 = pnand %p2973_p3, %p2970_p1 }
  0xe8   : > { %2978 = shalt.err (!%p2975_p2)
}
  0xe9   : > { %s2979_s20 = scalar_lea.vmem %s417_s14, 16  ;;  %s2986_s13 = scalar_lea.vmem %s417_s14, 32 }
  0xea   : > { %p2980_p5 = scmp.ne.s32.totalorder %s417_s14, %s2979_s20  ;;  %p2987_p10 = scmp.lt.s32.totalorder %s417_s14, %s417_s14 }
  0xeb   : > { %p2988_p11 = scmp.lt.s32.totalorder %s2986_s13, %s2979_s20 }
  0xec   : > { %p2982_p7 = pnand %p2980_p5, %p3349_p8 }
  0xed   : > { %p2989_p12 = por %p2988_p11, %p2987_p10 }
  0xee   : > { %p2983_p9 = pneg %p2982_p7 }
  0xf0   : > { %p2990_p4 = pnand %p2989_p12, %p2983_p9 }
  0xf2   : > { %2993 = shalt.err (!%p2990_p4)
}
  0xf3   : > { %2559 = dma.hbm_to_vmem [thread:$0]  (!%p3335_p6), %s4017_s6, 16, %s417_s14, [#allocation12]  }
  0xf4   : > { %s3211_s0 = smov [#allocation16]   ;;  %s3212_s23 = smov [#allocation19]  }
  0xf5   : > { %s438_s15 = sshll.u32 %s3211_s0, 4  ;;  %s462_s19 = sshll.u32 %s3212_s23, 4  ;;  %s439_s15 = int_to_ptr.vmem [resolvable:$true] %s438_s15  ;;  %s463_s19 = int_to_ptr.vmem [resolvable:$true] %s462_s19 }
  0xf6   : > { %s2994_s22 = scalar_lea.hbm %s4019_s8, 16 }
  0xf7   : > { %p2995_p13 = scmp.ne.s32.totalorder %s4019_s8, %s2994_s22  ;;  %p3001_p3 = scmp.lt.u32.totalorder %s2994_s22, %s4019_s8 }
  0xf9   : > { %p2997_p0 = pnand %p2995_p13, %p3349_p8 }
  0xfb   : > { %p2998_p1 = pneg %p2997_p0 }
  0xfd   : > { %p3003_p2 = pnand %p3001_p3, %p2998_p1 }
  0xff   : > { %3006 = shalt.err (!%p3003_p2)
}
 0x100   : > { %s3007_s14 = scalar_lea.vmem %s439_s15, 16  ;;  %s3014_s13 = scalar_lea.vmem %s439_s15, 32 }
 0x101   : > { %p3008_p5 = scmp.ne.s32.totalorder %s439_s15, %s3007_s14  ;;  %p3015_p10 = scmp.lt.s32.totalorder %s439_s15, %s439_s15 }
 0x102   : > { %p3016_p11 = scmp.lt.s32.totalorder %s3014_s13, %s3007_s14 }
 0x103   : > { %p3010_p7 = pnand %p3008_p5, %p3349_p8 }
 0x104   : > { %p3017_p12 = por %p3016_p11, %p3015_p10 }
 0x105   : > { %p3011_p9 = pneg %p3010_p7 }
 0x107   : > { %p3018_p4 = pnand %p3017_p12, %p3011_p9 }
 0x109   : > { %3021 = shalt.err (!%p3018_p4)
}
 0x10a   : > { %2565 = dma.hbm_to_vmem [thread:$0]  (!%p3335_p6), %s4019_s8, 16, %s439_s15, [#allocation15]  }
 0x10b   : > { %s3022_s3 = scalar_lea.hbm %s4021_s10, 16 }
 0x10c   : > { %p3023_p13 = scmp.ne.s32.totalorder %s4021_s10, %s3022_s3  ;;  %p3029_p3 = scmp.lt.u32.totalorder %s3022_s3, %s4021_s10 }
 0x10e   : > { %p3025_p0 = pnand %p3023_p13, %p3349_p8 }
 0x110   : > { %p3026_p1 = pneg %p3025_p0 }
 0x112   : > { %p3031_p2 = pnand %p3029_p3, %p3026_p1 }
 0x114   : > { %3034 = shalt.err (!%p3031_p2)
}
 0x115   : > { %s3035_s1 = scalar_lea.vmem %s463_s19, 16  ;;  %s3042_s15 = scalar_lea.vmem %s463_s19, 32 }
 0x116   : > { %p3036_p5 = scmp.ne.s32.totalorder %s463_s19, %s3035_s1  ;;  %p3043_p10 = scmp.lt.s32.totalorder %s463_s19, %s463_s19 }
 0x117   : > { %p3044_p11 = scmp.lt.s32.totalorder %s3042_s15, %s3035_s1 }
 0x118   : > { %p3038_p7 = pnand %p3036_p5, %p3349_p8 }
 0x119   : > { %p3045_p12 = por %p3044_p11, %p3043_p10 }
 0x11a   : > { %p3039_p9 = pneg %p3038_p7 }
 0x11c   : > { %p3046_p4 = pnand %p3045_p12, %p3039_p9 }
 0x11e   : > { %3049 = shalt.err (!%p3046_p4)
}
 0x11f   : > { %2571 = dma.hbm_to_vmem [thread:$0]  (!%p3335_p6), %s4021_s10, 16, %s463_s19, [#allocation18]  }
 0x120   : > { %s3213_s13 = smov [#allocation22]   ;;  %s3050_s23 = scalar_lea.hbm %s4023_s12, 16 }
 0x121   : > { %s486_s24 = sshll.u32 %s3213_s13, 4  ;;  %p3051_p13 = scmp.ne.s32.totalorder %s4023_s12, %s3050_s23  ;;  %s487_s24 = int_to_ptr.vmem [resolvable:$true] %s486_s24 }
 0x122   : > { %p3057_p3 = scmp.lt.u32.totalorder %s3050_s23, %s4023_s12 }
 0x123   : > { %p3053_p0 = pnand %p3051_p13, %p3349_p8 }
 0x125   : > { %p3054_p1 = pneg %p3053_p0 }
 0x127   : > { %p3059_p2 = pnand %p3057_p3, %p3054_p1 }
 0x129   : > { %3062 = shalt.err (!%p3059_p2)
}
 0x12a   : > { %s3063_s19 = scalar_lea.vmem %s487_s24, 16  ;;  %s3070_s17 = scalar_lea.vmem %s487_s24, 32 }
 0x12b   : > { %p3064_p5 = scmp.ne.s32.totalorder %s487_s24, %s3063_s19  ;;  %p3071_p10 = scmp.lt.s32.totalorder %s487_s24, %s487_s24 }
 0x12c   : > { %p3072_p11 = scmp.lt.s32.totalorder %s3070_s17, %s3063_s19 }
 0x12d   : > { %p3066_p7 = pnand %p3064_p5, %p3349_p8 }
 0x12e   : > { %p3073_p12 = por %p3072_p11, %p3071_p10 }
 0x12f   : > { %p3067_p9 = pneg %p3066_p7 }
 0x131   : > { %p3074_p4 = pnand %p3073_p12, %p3067_p9 }
 0x133   : > { %3077 = shalt.err (!%p3074_p4)
}
 0x134   : > { %s4049_s16 = sld [smem:[#allocation32_spill]]  ;;  %s2221_s20 = sadd.s32 4294967294, %s3198_s28  }
 0x135   : > { %2577 = dma.hbm_to_vmem [thread:$0]  (!%p3335_p6), %s4023_s12, 16, %s487_s24, [#allocation21]  }
 0x136   : > { %s3593_s18 = sadd.s32 1, %s3198_s28   ;;  %s42_s13 = sadd.s32 1, %s3194_s27 }
 0x137   : > { %s39_s14 = ssub.s32 %s3198_s28, %s3593_s18  ;;  %p49_p13 = scmp.ne.s32.totalorder %s3194_s27, %s3190_s26 }
 0x138   : > { %p40_p8 = scmp.eq.s32.totalorder %s39_s14, 0  ;;  %p50_p0 = scmp.eq.s32.totalorder %s3198_s28, 0 }
 0x139   : > { %p55_p1 = scmp.ne.s32.totalorder %s3190_s26, %s3186_s25  ;;  %p337_p7 = scmp.eq.s32.totalorder %s2221_s20, 1 }
 0x13a   : > { %s3604_s29 = scalar_select %p40_p8, %s3194_s27, %s42_s13  }
 0x13b   : > { %p51_p3 = por %p50_p0, %p49_p13  ;;  %p4050_p2 = scmp.eq.s32.totalorder %s4049_s16, 0 }
 0x13c   : > { %p331_p6 = scmp.eq.s32.totalorder %s4049_s16, 1  ;;  %p2598_p9 = scmp.lt.s32.totalorder %s3198_s28, 2 }
 0x13d   : > { %p3608_p5 = por %p4050_p2, %p55_p1  ;;  %s497_s24 = sand.u32 1, %s3194_s27  }
 0x13e   : > { %p3615_p10 = por %p331_p6, %p49_p13  ;;  %p3619_p11 = por %p337_p7, %p55_p1 }
 0x13f   : > { %s2485_s21 = smul.u32 24, %s497_s24  ;;  %p3624_p12 = pnand %p2598_p9, %p51_p3 }
 0x140   : > { %s4052_s23 = scalar_select %p3615_p10, 1, 0 }
 0x141   : > { %s4053_s3 = scalar_select %p3619_p11, 1, 0 }
 0x142   : > { %s2486_s22 = smul.u32 384, %s3198_s28  ;;  %s4055_s1 = sld [smem:[#allocation34_spill]] }
 0x143   : > { %s501_s16 = scalar_lea.vmem [#allocation2], %s2485_s21  ;;  %s3635_s14 = scalar_lea.sflag [#allocation3], %s497_s24 }
 0x144   : > { %s508_s20 = sshll.u32 %s501_s16, 4  ;;  %p3080_p8 = pneg %p3624_p12  ;;  %s3633_s20 = int_to_ptr.vmem [resolvable:$true] %s508_s20 }
 0x148   : > { %s3631_s15 = scalar_lea.hbm %s4055_s1, %s2486_s22  ;;  %s3083_s17 = scalar_lea.hbm %s4055_s1, 768 }
 0x149   : > { %s3078_s13 = scalar_lea.hbm %s3631_s15, 384  ;;  %p3084_p1 = scmp.lt.u32.totalorder %s3631_s15, %s4055_s1 }
 0x14a   : > { %p3079_p4 = scmp.ne.s32.totalorder %s3631_s15, %s3078_s13  ;;  %p3085_p3 = scmp.lt.u32.totalorder %s3083_s17, %s3078_s13 }
 0x14b   : > { %p3087_p6 = scmp.lt.u32.totalorder %s3078_s13, %s3631_s15 }
 0x14c   : > { %p3081_p13 = pnand %p3080_p8, %p3079_p4  ;;  %p3086_p2 = por %p3085_p3, %p3084_p1 }
 0x14e   : > { %p3082_p0 = pneg %p3081_p13  ;;  %p3088_p7 = por %p3087_p6, %p3086_p2 }
 0x150   : > { %p3089_p9 = pnand %p3088_p7, %p3082_p0 }
 0x152   : > { %3092 = shalt.err (!%p3089_p9)
}
 0x153   : > { %s3093_s24 = scalar_lea.vmem %s3633_s20, 384  ;;  %s3214_s21 = smov [#allocation2]  }
 0x154   : > { %p3094_p4 = scmp.ne.s32.totalorder %s3633_s20, %s3093_s24  ;;  %s3098_s16 = sshll.u32 %s3214_s21, 4  ;;  %s3099_s16 = int_to_ptr.vmem [resolvable:$false] %s3098_s16 }
 0x155   : > { %s3100_s2 = scalar_lea.vmem %s3099_s16, 768  ;;  %p3101_p10 = scmp.lt.s32.totalorder %s3633_s20, %s3099_s16 }
 0x156   : > { %p3096_p13 = pnand %p3094_p4, %p3080_p8  ;;  %p3102_p1 = scmp.lt.s32.totalorder %s3100_s2, %s3093_s24 }
 0x158   : > { %p3097_p11 = pneg %p3096_p13  ;;  %p3103_p3 = por %p3102_p1, %p3101_p10 }
 0x15a   : > { %p3104_p2 = pnand %p3103_p3, %p3097_p11 }
 0x15c   : > { %3107 = shalt.err (!%p3104_p2)
}
 0x15d   : > { %s3215_s4 = smov 128   ;;  %s3216_s13 = smov 8  }
 0x15e   : > { %2581 = dma.hbm_to_vmem [thread:$0]  (!%p3624_p12), %s3631_s15, 384, %s3633_s20, %s3635_s14, %s3215_s4, %s3215_s4, %s3216_s13  }
 0x15f   : > { %s4056_s22 = sld [smem:[#allocation33_spill]] }
 0x165   : > { %p4057_p8 = scmp.ne.s32.totalorder %s4056_s22, 0 }
 0x166   : > { %s3666_s19 = sand.u32 (!%p4057_p8), 1, %s3190_s26  }
 0x167   : > { %520 = sbr.rel (%p4057_p8) target bundleno = 3019 (0xbcb), region = 72  ;;  %s523_s24 = scalar_lea.sflag (!%p4057_p8), [#allocation3], %s3666_s19 }
 0x168   : > { %s2487_s17 = smul.u32 (!%p4057_p8), 24, %s3666_s19 }
 0x16a   : > { %s526_s21 = scalar_lea.vmem (!%p4057_p8), [#allocation2], %s2487_s17 }
 0x16e   : > { %3153 = dma.done.wait (%p3608_p5), %s523_s24, 384  }
 0x16f   : > { %3155 = vsyncadd (%p3608_p5), %s523_s24, 4294966912  ;;  %s4058_s30 = sld [smem:[#allocation32_spill]] }
 0x175   : > { %p4059_p10 = scmp.eq.s32.totalorder %s4058_s30, 0 }
 0x177   : > { %3157 = dma.done.wait (%p4059_p10), [#allocation6], 32   ;;  %p4060_p11 = pmov %p4059_p10 }
 0x178   : > { %p4061_p12 = pmov %p4059_p10 }
 0x179   : > { %3159 = vsyncadd (%p4060_p11), [#allocation6], 4294967264 }
 0x17a   : > { %3161 = dma.done.wait (%p4061_p12), [#allocation9], 272   ;;  %p4062_p0 = pmov %p4059_p10 }
 0x17c   : > { %3163 = vsyncadd (%p4062_p0), [#allocation9], 4294967024  ;;  %p4063_p6 = pmov %p4062_p0 }
 0x17d   : > { %p4064_p7 = pmov %p4062_p0 }
 0x17e   : > { %3165 = dma.done.wait (%p4063_p6), [#allocation12], 272  }
 0x17f   : > { %3167 = vsyncadd (%p4064_p7), [#allocation12], 4294967024  ;;  %p4065_p5 = pmov %p4062_p0 }
 0x180   : > { %p4066_p9 = pmov %p4062_p0 }
 0x181   : > { %3169 = dma.done.wait (%p4065_p5), [#allocation15], 32  }
 0x182   : > { %3171 = vsyncadd (%p4066_p9), [#allocation15], 4294967264  ;;  %p4067_p4 = pmov %p4062_p0 }
 0x183   : > { %p4068_p13 = pmov %p4062_p0 }
 0x184   : > { %3173 = dma.done.wait (%p4067_p4), [#allocation18], 272  }
 0x185   : > { %3175 = vsyncadd (%p4068_p13), [#allocation18], 4294967024  ;;  %p4069_p1 = pmov %p4062_p0 }
 0x186   : > { %p4070_p3 = pmov %p4062_p0 }
 0x187   : > { %3177 = dma.done.wait (%p4069_p1), [#allocation21], 528  }
 0x188   : > { %3179 = vsyncadd (%p4070_p3), [#allocation21], 4294966768  ;;  %vm623_vm0 = vcmask 261120   ;;  %vm630_vm1 = vcmask 253952   ;;  %v3700_v0 = vld [vmem:[%s526_s21] sm:$0xff]  ;;  %v3704_v2 = vld [vmem:[%s526_s21 + $0x8] sm:$0xff] }
 0x189   : > { %v3702_v1 = vld [vmem:[%s526_s21 + $0x10] sm:$0x1]  ;;  %v624_v3 = vsel %vm623_vm0, %v3700_v0, 0.0  ;;  %v627_v5 = vsel %vm623_vm0, %v3704_v2, 0.0  ;;  %v2668_v21 = vld [vmem:[#allocation8] sm:$0xff]   ;;  %v2669_v22 = vld [vmem:[#allocation8 + $0x8] sm:$0xff]  }
 0x18a   : > { %v631_v4 = vsel %vm630_vm1, %v3702_v1, 0.0  ;;  %625 = vadd.xlane.f32.xlu0 %v624_v3  ;;  %2357 = vmatprep.subr.bf16.mxu1 %v2668_v21  ;;  %v2250_v34 = vld [vmem:[#allocation5] ss:$0 sm:$0xff]  ;;  %v2251_v40 = vld [vmem:[#allocation7] ss:$0 sm:$0xff]  ;;  %s3217_s0 = smov 120  }
 0x18b   : > { %632 = vadd.xlane.f32.xlu1 %v631_v4  ;;  %2358 = vmatpush3.bf16.msra.mxu1 %v2668_v21  ;;  %v2252_v48 = vld [vmem:[#allocation10] ss:$0 sm:$0xff]  ;;  %vm826_vm2 = vcmask 64512   ;;  %s3218_s15 = smov 112   ;;  %s3219_s20 = smov 104   ;;  %vm1092_vm3 = vcmask 131072  }
 0x18c   : > { %2359 = vmatprep.subr.bf16.mxu1 %v2669_v22  ;;  %s3220_s14 = smov 96   ;;  %vm1085_vm4 = vcmask 138240   ;;  %s3221_s16 = smov 64   ;;  %vm1238_vm5 = vcmask 1040384   ;;  %vm1496_vm6 = vcmask 1043456   ;;  %vm1959_vm7 = vcmask 523264  }
 0x18d   : > { %s616_s2 = scalar_lea.vmem [#allocation23], %s2487_s17  ;;  %s2488_s13 = smul.u32 384, %s4058_s30 }
 0x18e   : > { %628 = vadd.xlane.f32.xlu0 %v627_v5  ;;  %s2034_s4 = sshll.u32 %s616_s2, 4  ;;  %s4071_s24 = sld [smem:[#allocation39_spill]]  ;;  %s3957_s4 = int_to_ptr.vmem [resolvable:$true] %s2034_s4 }
 0x18f   : > { %2360 = vmatpush3.bf16.msra.mxu1 %v2669_v22  ;;  %s2021_s30 = scalar_lea.sflag [#allocation4], %s3666_s19  ;;  %p4072_p8 = scmp.ne.s32.totalorder %s4052_s23, 0 }
 0x194   : > { %s3966_s21 = scalar_lea.hbm %s4071_s24, %s2488_s13 }
 0x217   : > { %v626_v6 = vpop.xlane.xlu0 %625 }
 0x218   : > { %v633_v7 = vpop.xlane.xlu1 %632  ;;  %v635_v8 = vmul.f32 0.03125, %v626_v6 }
 0x219   : > { %v637_v9 = vmul.f32 0.03125, %v633_v7 }
 0x21a   : > { %v638_v10 = vsub.f32 %v3700_v0, %v635_v8 }
 0x21b   : > { %v640_v11 = vsub.f32 %v3702_v1, %v637_v9  ;;  %v629_v12 = vpop.xlane.xlu0 %628 }
 0x21c   : > { %v636_v13 = vmul.f32 0.03125, %v629_v12  ;;  %v641_v14 = vmul.f32 %v638_v10, %v638_v10 }
 0x21d   : > { %v643_v15 = vmul.f32 %v640_v11, %v640_v11 }
 0x21e   : > { %v639_v16 = vsub.f32 %v3704_v2, %v636_v13  ;;  %v644_v17 = vsel %vm623_vm0, %v641_v14, 0.0 }
 0x21f   : > { %645 = vadd.xlane.f32.xlu1 %v644_v17  ;;  %v650_v18 = vsel %vm630_vm1, %v643_v15, 0.0 }
 0x220   : > { %v642_v19 = vmul.f32 %v639_v16, %v639_v16 }
 0x222   : > { %v647_v20 = vsel %vm623_vm0, %v642_v19, 0.0 }
 0x223   : > { %651 = vadd.xlane.f32.xlu1 %v650_v18  ;;  %648 = vadd.xlane.f32.xlu0 %v647_v20 }
 0x2ac   : > { %v646_v23 = vpop.xlane.xlu1 %645 }
 0x2ad   : > { %v653_v24 = vmul.f32 0.03125, %v646_v23 }
 0x2af   : > { %v656_v25 = vadd.f32 1e-05, %v653_v24 }
 0x2b0   : > { %v652_v26 = vpop.xlane.xlu1 %651  ;;  %v649_v27 = vpop.xlane.xlu0 %648 }
 0x2b1   : > { %2676 = vrsqrt.f32 %v656_v25  ;;  %v655_v28 = vmul.f32 0.03125, %v652_v26  ;;  %v654_v29 = vmul.f32 0.03125, %v649_v27 }
 0x2b3   : > { %v658_v30 = vadd.f32 1e-05, %v655_v28  ;;  %v657_v31 = vadd.f32 1e-05, %v654_v29 }
 0x2b5   : > { %2678 = vrsqrt.f32 %v658_v30 }
 0x2b6   : > { %2680 = vrsqrt.f32 %v657_v31 }
 0x2bb   : > { %v2677_v32 = vpop.eup %2676 }
 0x2bc   : > { %v662_v33 = vmul.f32 %v2677_v32, %v638_v10 }
 0x2be   : > { %v671_v39 = vmul.f32 %v2250_v34, %v662_v33 }
 0x2bf   : > { %v2679_v35 = vpop.eup %2678 }
 0x2c0   : > { %v2681_v36 = vpop.eup %2680  ;;  %v664_v37 = vmul.f32 %v2679_v35, %v640_v11  ;;  %v680_v44 = vadd.f32 %v2251_v40, %v671_v39 }
 0x2c1   : > { %v663_v38 = vmul.f32 %v2681_v36, %v639_v16 }
 0x2c2   : > { %v673_v41 = vmul.f32 %v2250_v34, %v664_v37 }
 0x2c3   : > { %v672_v42 = vmul.f32 %v2250_v34, %v663_v38 }
 0x2c4   : > { %v682_v43 = vadd.f32 %v2251_v40, %v673_v41 }
 0x2c5   : > { %v681_v45 = vadd.f32 %v2251_v40, %v672_v42 }
 0x2c6   : > { %v684_v46 = vpack.c.bf16 %v682_v43, %v682_v43 }
 0x2c7   : > { %v683_v47 = vpack.c.bf16 %v681_v45, %v680_v44 }
 0x2c9   : > { %2361 = vmatprep.mubr.msk.bf16.mxu1 %vm623_vm0, %v683_v47 }
 0x2ca   : > { %2362 = vmatmul.mubr.msk.bf16.vlgmr.msra.gmra.mrb[0].mxu1 %vm623_vm0, %v684_v46 }
 0x39d   : > { %v2363_v49 = vpop.f32.mrb[0].mxu1 }
 0x39e   : > { %v748_v50 = vpop.f32.mrb[1].mxu1  ;;  %v757_v58 = vadd.f32 %v2363_v49, %v2252_v48 }
 0x39f   : > { %v749_v51 = vadd.f32 %v2252_v48, %v748_v50  ;;  %v2364_v52 = vpop.f32.mrb[2].mxu1 }
 0x3a0   : > { %v751_v53 = vpop.f32.mrb[3].mxu1  ;;  %v3725_v60 = vpack.c.bf16 %v757_v58, %v757_v58  ;;  %v794_v25 = vmul.f32 0.35355338, %v757_v58 }
 0x3a1   : > { %v752_v54 = vadd.f32 %v2252_v48, %v751_v53  ;;  %765 = vrot.lane.b32.xlu0 %v749_v51, %s3217_s0  ;;  %v792_v55 = vmul.f32 0.35355338, %v749_v51 }
 0x3a2   : > { %v805_v28 = vpack.c.bf16 %v794_v25, %v794_v25 }
 0x3a3   : > { %767 = vrot.lane.b32.xlu1 %v752_v54, %s3217_s0  ;;  %v793_v56 = vmul.f32 0.35355338, %v752_v54  ;;  %v3720_v57 = vpack.c.bf16 %v752_v54, %v749_v51 }
 0x3a5   : > { %776 = vrot.lane.b32.xlu0 %v752_v54, %s3218_s15  ;;  %v804_v59 = vpack.c.bf16 %v793_v56, %v792_v55 }
 0x3a7   : > { %769 = vrot.lane.b32.xlu1 %v757_v58, %s3217_s0  ;;  %2369 = vmatprep.mubr.msk.bf16.mxu1 %vm826_vm2, %v804_v59  ;;  %s3108_s0 = scalar_lea.vmem %s3957_s4, 384 }
 0x3a8   : > { %p3109_p2 = scmp.ne.s32.totalorder %s3957_s4, %s3108_s0 }
 0x3a9   : > { %785 = vrot.lane.b32.xlu0 %v752_v54, %s3219_s20 }
 0x3aa   : > { %p3110_p10 = pnand %p3109_p2, %p4072_p8 }
 0x3ab   : > { %774 = vrot.lane.b32.xlu1 %v749_v51, %s3218_s15 }
 0x3ac   : > { %p3111_p11 = pneg %p3110_p10 }
 0x3ad   : > { %787 = vrot.lane.b32.xlu0 %v757_v58, %s3219_s20 }
 0x3af   : > { %783 = vrot.lane.b32.xlu1 %v749_v51, %s3219_s20 }
 0x3b3   : > { %778 = vrot.lane.b32.xlu1 %v757_v58, %s3218_s15  ;;  %s3223_s15 = smov [#allocation23]  }
 0x3b4   : > { %s3112_s20 = sshll.u32 %s3223_s15, 4  ;;  %s3113_s20 = int_to_ptr.vmem [resolvable:$false] %s3112_s20 }
 0x3b5   : > { %p3115_p12 = scmp.lt.s32.totalorder %s3957_s4, %s3113_s20 }
 0x3b7   : > { %822 = vrot.lane.b32.xlu1 %v3720_v57, %s3220_s14 }
 0x3bb   : > { %824 = vrot.lane.b32.xlu1 %v3725_v60, %s3220_s14 }
 0x413   : > { %v766_v61 = vpop.permute.xlu0 %765 }
 0x414   : > { %v795_v63 = vmul.f32 0.35355338, %v766_v61 }
 0x415   : > { %v768_v62 = vpop.permute.xlu1 %767 }
 0x416   : > { %v796_v3 = vmul.f32 0.35355338, %v768_v62  ;;  %v3729_v4 = vpack.c.bf16 %v768_v62, %v766_v61 }
 0x417   : > { %v777_v5 = vpop.permute.xlu0 %776 }
 0x418   : > { %889 = vrot.lane.b32.xlu0 %v3729_v4, %s3220_s14  ;;  %v806_v6 = vpack.c.bf16 %v796_v3, %v795_v63  ;;  %v799_v27 = vmul.f32 0.35355338, %v777_v5 }
 0x419   : > { %v770_v7 = vpop.permute.xlu1 %769 }
 0x41a   : > { %v3733_v8 = vpack.c.bf16 %v770_v7, %v770_v7  ;;  %2377 = vmatprep.mubr.msk.bf16.mxu0 %vm826_vm2, %v806_v6  ;;  %v797_v36 = vmul.f32 0.35355338, %v770_v7 }
 0x41b   : > { %v786_v9 = vpop.permute.xlu0 %785 }
 0x41c   : > { %891 = vrot.lane.b32.xlu0 %v3733_v8, %s3220_s14  ;;  %v802_v13 = vmul.f32 0.35355338, %v786_v9  ;;  %v807_v38 = vpack.c.bf16 %v797_v36, %v797_v36 }
 0x41d   : > { %v775_v10 = vpop.permute.xlu1 %774 }
 0x41e   : > { %v3738_v11 = vpack.c.bf16 %v777_v5, %v775_v10  ;;  %v798_v26 = vmul.f32 0.35355338, %v775_v10 }
 0x41f   : > { %v788_v16 = vpop.permute.xlu0 %787 }
 0x420   : > { %955 = vrot.lane.b32.xlu1 %v3738_v11, %s3220_s14  ;;  %v3746_v19 = vpack.c.bf16 %v788_v16, %v788_v16  ;;  %v808_v29 = vpack.c.bf16 %v799_v27, %v798_v26  ;;  %v803_v46 = vmul.f32 0.35355338, %v788_v16 }
 0x421   : > { %v784_v12 = vpop.permute.xlu1 %783 }
 0x422   : > { %v801_v14 = vmul.f32 0.35355338, %v784_v12  ;;  %v3742_v15 = vpack.c.bf16 %v786_v9, %v784_v12  ;;  %v811_v47 = vpack.c.bf16 %v803_v46, %v803_v46 }
 0x424   : > { %v810_v17 = vpack.c.bf16 %v802_v13, %v801_v14  ;;  %1021 = vrot.lane.b32.xlu0 %v3742_v15, %s3220_s14 }
 0x425   : > { %v779_v18 = vpop.permute.xlu1 %778 }
 0x426   : > { %v3748_v20 = vpack.c.bf16 %v779_v18, %v779_v18  ;;  %v800_v43 = vmul.f32 0.35355338, %v779_v18 }
 0x428   : > { %1023 = vrot.lane.b32.xlu0 %v3746_v19, %s3220_s14  ;;  %957 = vrot.lane.b32.xlu1 %v3748_v20, %s3220_s14  ;;  %v809_v44 = vpack.c.bf16 %v800_v43, %v800_v43  ;;  %s3114_s14 = scalar_lea.vmem %s3113_s20, 768 }
 0x429   : > { %v823_v21 = vpop.permute.xlu1 %822  ;;  %p3116_p0 = scmp.lt.s32.totalorder %s3114_s14, %s3108_s0 }
 0x42a   : > { %v834_v22 = vsel %vm826_vm2, %v823_v21, 0  ;;  %2473 = vmatprep.subr.msk.bf16.mxu1 %vm826_vm2, %v823_v21 }
 0x42b   : > { %2366 = vmatpush3.bf16.xpose.msra.mxu1 %v834_v22  ;;  %p3117_p6 = por %p3116_p0, %p3115_p12 }
 0x42d   : > { %v825_v23 = vpop.permute.xlu1 %824  ;;  %p3118_p7 = pnand %p3117_p6, %p3111_p11 }
 0x42e   : > { %2474 = vmatprep.subr.msk.bf16.mxu1 %vm826_vm2, %v825_v23  ;;  %v837_v24 = vsel %vm826_vm2, %v825_v23, 0 }
 0x433   : > { %2368 = vmatpush3.bf16.xpose.msra.mxu1 %v837_v24 }
 0x43a   : > { %2370 = vmatmul.mubr.msk.bf16.vlgmr.msra.gmra.mrb[4].mxu1 %vm826_vm2, %v805_v28 }
 0x43b   : > { %2385 = vmatprep.mubr.msk.bf16.mxu1 %vm826_vm2, %v808_v29 }
 0x48a   : > { %v890_v30 = vpop.permute.xlu0 %889 }
 0x48b   : > { %2475 = vmatprep.subr.msk.bf16.mxu0 %vm826_vm2, %v890_v30  ;;  %v900_v31 = vsel %vm826_vm2, %v890_v30, 0 }
 0x48c   : > { %2374 = vmatpush3.bf16.xpose.msra.mxu0 %v900_v31 }
 0x48e   : > { %v892_v32 = vpop.permute.xlu0 %891 }
 0x48f   : > { %2476 = vmatprep.subr.msk.bf16.mxu0 %vm826_vm2, %v892_v32  ;;  %v903_v35 = vsel %vm826_vm2, %v892_v32, 0 }
 0x492   : > { %v956_v33 = vpop.permute.xlu1 %955 }
 0x493   : > { %v966_v34 = vsel %vm826_vm2, %v956_v33, 0  ;;  %2477 = vmatprep.subr.msk.bf16.mxu1 %vm826_vm2, %v956_v33 }
 0x494   : > { %2376 = vmatpush3.bf16.xpose.msra.mxu0 %v903_v35  ;;  %2382 = vmatpush3.bf16.xpose.msra.mxu1 %v966_v34 }
 0x496   : > { %v1022_v37 = vpop.permute.xlu0 %1021 }
 0x497   : > { %2479 = vmatprep.subr.msk.bf16.mxu0 %vm826_vm2, %v1022_v37  ;;  %v1032_v40 = vsel %vm826_vm2, %v1022_v37, 0 }
 0x49a   : > { %v958_v39 = vpop.permute.xlu1 %957  ;;  %v1024_v42 = vpop.permute.xlu0 %1023 }
 0x49b   : > { %v969_v41 = vsel %vm826_vm2, %v958_v39, 0  ;;  %2378 = vmatmul.mubr.msk.bf16.vlgmr.msra.gmra.mrb[0].mxu0 %vm826_vm2, %v807_v38  ;;  %2478 = vmatprep.subr.msk.bf16.mxu1 %vm826_vm2, %v958_v39  ;;  %v1035_v45 = vsel %vm826_vm2, %v1024_v42, 0 }
 0x49c   : > { %2384 = vmatpush3.bf16.xpose.msra.mxu1 %v969_v41  ;;  %2390 = vmatpush3.bf16.xpose.msra.mxu0 %v1032_v40 }
 0x49d   : > { %2393 = vmatprep.mubr.msk.bf16.mxu0 %vm826_vm2, %v810_v17  ;;  %2480 = vmatprep.subr.msk.bf16.mxu0 %vm826_vm2, %v1024_v42 }
 0x4a3   : > { %2386 = vmatmul.mubr.msk.bf16.vlgmr.msra.gmra.mrb[8].mxu1 %vm826_vm2, %v809_v44 }
 0x4a4   : > { %2392 = vmatpush3.bf16.xpose.msra.mxu0 %v1035_v45 }
 0x4ab   : > { %2394 = vmatmul.mubr.msk.bf16.vlgmr.msra.gmra.mrb[4].mxu0 %vm826_vm2, %v811_v47 }
 0x50d   : > { %v2371_v48 = vpop.f32.mrb[4].mxu1 }
 0x50e   : > { %v873_v49 = vpop.f32.mrb[5].mxu1  ;;  %v1093_v50 = vsel %vm1092_vm3, %v2371_v48, -inf }
 0x50f   : > { %1094 = vmax.xlane.f32.xlu0 %v1093_v50  ;;  %v2372_v51 = vpop.f32.mrb[6].mxu1  ;;  %v1086_v52 = vsel %vm1085_vm4, %v873_v49, -inf }
 0x510   : > { %1087 = vmax.xlane.f32.xlu1 %v1086_v52  ;;  %v876_v53 = vpop.f32.mrb[7].mxu1 }
 0x511   : > { %v1089_v54 = vsel %vm1085_vm4, %v876_v53, -inf }
 0x513   : > { %1090 = vmax.xlane.f32.xlu0 %v1089_v54 }
 0x56e   : > { %v2379_v55 = vpop.f32.mrb[0].mxu0 }
 0x56f   : > { %v3779_v56 = vpop.f32.mrb[1].mxu0  ;;  %v1102_v58 = vsel %vm1092_vm3, %v2379_v55, -inf }
 0x570   : > { %v2380_v59 = vpop.f32.mrb[2].mxu0  ;;  %1103 = vmax.xlane.f32.xlu0 %v1102_v58  ;;  %v1096_v62 = vsel %vm1085_vm4, %v3779_v56, -inf }
 0x571   : > { %v3782_v61 = vpop.f32.mrb[3].mxu0 }
 0x572   : > { %v1099_v14 = vsel %vm1085_vm4, %v3782_v61, -inf }
 0x574   : > { %1097 = vmax.xlane.f32.xlu0 %v1096_v62  ;;  %v3222_v62 = vmov 0  }
 0x576   : > { %v2387_v63 = vpop.f32.mrb[8].mxu1 }
 0x577   : > { %v3786_v3 = vpop.f32.mrb[9].mxu1  ;;  %v1111_v5 = vsel %vm1092_vm3, %v2387_v63, -inf }
 0x578   : > { %1112 = vmax.xlane.f32.xlu1 %v1111_v5  ;;  %v2388_v6 = vpop.f32.mrb[10].mxu1  ;;  %v1105_v10 = vsel %vm1085_vm4, %v3786_v3, -inf }
 0x579   : > { %v1008_v7 = vpop.f32.mrb[11].mxu1 }
 0x57a   : > { %v1108_v9 = vsel %vm1085_vm4, %v1008_v7, -inf }
 0x57b   : > { %1109 = vmax.xlane.f32.xlu0 %v1108_v9 }
 0x57c   : > { %1106 = vmax.xlane.f32.xlu1 %v1105_v10 }
 0x57e   : > { %v3792_v12 = vpop.f32.mrb[4].mxu0 }
 0x57f   : > { %v3794_v13 = vpop.f32.mrb[5].mxu0  ;;  %v1120_v21 = vsel %vm1092_vm3, %v3792_v12, -inf }
 0x580   : > { %v2396_v16 = vpop.f32.mrb[6].mxu0  ;;  %1100 = vmax.xlane.f32.xlu1 %v1099_v14  ;;  %v1114_v17 = vsel %vm1085_vm4, %v3794_v13, -inf }
 0x581   : > { %v3800_v18 = vpop.f32.mrb[7].mxu0  ;;  %1115 = vmax.xlane.f32.xlu0 %v1114_v17 }
 0x582   : > { %v1117_v26 = vsel %vm1085_vm4, %v3800_v18, -inf }
 0x585   : > { %1121 = vmax.xlane.f32.xlu0 %v1120_v21 }
 0x591   : > { %1227 = vrot.lane.b32.xlu1 %v3720_v57, %s3221_s16 }
 0x595   : > { %1292 = vrot.lane.b32.xlu1 %v3729_v4, %s3221_s16 }
 0x59b   : > { %1229 = vrot.lane.b32.xlu0 %v3725_v60, %s3221_s16 }
 0x59c   : > { %v1095_v22 = vpop.xlane.xlu0 %1094 }
 0x59d   : > { %v1125_v60 = vsub.f32 %v2371_v48, %v1095_v22  ;;  %v1088_v4 = vpop.xlane.xlu1 %1087 }
 0x59e   : > { %v1123_v28 = vsub.f32 %v873_v49, %v1088_v4 }
 0x59f   : > { %1356 = vrot.lane.b32.xlu0 %v3748_v20, %s3221_s16  ;;  %v1139_v20 = vmul.f32 1.442695, %v1125_v60 }
 0x5a0   : > { %v1091_v23 = vpop.xlane.xlu0 %1090  ;;  %v1135_v29 = vmul.f32 1.442695, %v1123_v28 }
 0x5a1   : > { %v1124_v24 = vsub.f32 %v876_v53, %v1091_v23 }
 0x5a3   : > { %v1137_v25 = vmul.f32 1.442695, %v1124_v24 }
 0x5a5   : > { %2682 = vpow2.f32 %v1137_v25 }
 0x5a6   : > { %2684 = vpow2.f32 %v1139_v20 }
 0x5a7   : > { %2686 = vpow2.f32 %v1135_v29 }
 0x5af   : > { %v3814_v27 = vpop.eup %2682 }
 0x5b0   : > { %v1162_v57 = vsel %vm1085_vm4, %v3814_v27, 0.0  ;;  %v3822_v30 = vpop.eup %2684 }
 0x5b1   : > { %v1165_v31 = vsel %vm1092_vm3, %v3822_v30, 0.0  ;;  %v3826_v32 = vpop.eup %2686 }
 0x5b9   : > { %1118 = vmax.xlane.f32.xlu1 %v1117_v26 }
 0x5be   : > { %1163 = vadd.xlane.f32.xlu0 %v1162_v57 }
 0x5ca   : > { %1294 = vrot.lane.b32.xlu1 %v3733_v8, %s3221_s16  ;;  %v1159_v8 = vsel %vm1085_vm4, %v3826_v32, 0.0 }
 0x5ce   : > { %1354 = vrot.lane.b32.xlu1 %v3738_v11, %s3221_s16 }
 0x5f2   : > { %1166 = vadd.xlane.f32.xlu1 %v1165_v31 }
 0x5f6   : > { %1160 = vadd.xlane.f32.xlu1 %v1159_v8 }
 0x5fd   : > { %v1104_v11 = vpop.xlane.xlu0 %1103 }
 0x5fe   : > { %v1128_v33 = vsub.f32 %v2379_v55, %v1104_v11 }
 0x600   : > { %v1145_v34 = vmul.f32 1.442695, %v1128_v33 }
 0x601   : > { %v1098_v35 = vpop.xlane.xlu0 %1097 }
 0x602   : > { %2688 = vpow2.f32 %v1145_v34  ;;  %v1126_v36 = vsub.f32 %v3779_v56, %v1098_v35 }
 0x604   : > { %v1141_v37 = vmul.f32 1.442695, %v1126_v36 }
 0x605   : > { %v1113_v38 = vpop.xlane.xlu1 %1112 }
 0x606   : > { %2690 = vpow2.f32 %v1141_v37  ;;  %v1131_v39 = vsub.f32 %v2387_v63, %v1113_v38  ;;  %v3845_v63 = vsel %vm1238_vm5, 65535, %v3222_v62 }
 0x608   : > { %v1151_v40 = vmul.f32 1.442695, %v1131_v39  ;;  %v1110_v41 = vpop.xlane.xlu0 %1109 }
 0x609   : > { %v1130_v42 = vsub.f32 %v1008_v7, %v1110_v41  ;;  %v1107_v43 = vpop.xlane.xlu1 %1106 }
 0x60a   : > { %2692 = vpow2.f32 %v1151_v40  ;;  %v1129_v44 = vsub.f32 %v3786_v3, %v1107_v43 }
 0x60b   : > { %v1149_v45 = vmul.f32 1.442695, %v1130_v42 }
 0x60c   : > { %v3832_v46 = vpop.eup %2688  ;;  %v1147_v47 = vmul.f32 1.442695, %v1129_v44 }
 0x60d   : > { %2694 = vpow2.f32 %v1149_v45  ;;  %v1101_v48 = vpop.xlane.xlu1 %1100  ;;  %v1174_v49 = vsel %vm1092_vm3, %v3832_v46, 0.0 }
 0x60e   : > { %2696 = vpow2.f32 %v1147_v47  ;;  %v1127_v50 = vsub.f32 %v3782_v61, %v1101_v48  ;;  %1175 = vadd.xlane.f32.xlu0 %v1174_v49  ;;  %v1116_v51 = vpop.xlane.xlu0 %1115 }
 0x60f   : > { %v1132_v54 = vsub.f32 %v3794_v13, %v1116_v51 }
 0x610   : > { %v3837_v52 = vpop.eup %2690  ;;  %v1143_v53 = vmul.f32 1.442695, %v1127_v50 }
 0x611   : > { %v1228_v55 = vpop.permute.xlu1 %1227  ;;  %v1168_v56 = vsel %vm1085_vm4, %v3837_v52, 0.0  ;;  %v1153_v3 = vmul.f32 1.442695, %v1132_v54 }
 0x612   : > { %2698 = vpow2.f32 %v1143_v53  ;;  %2397 = vmatprep.subr.bf16.mxu1 %v1228_v55  ;;  %1169 = vadd.xlane.f32.xlu0 %v1168_v56  ;;  %v1122_v58 = vpop.xlane.xlu0 %1121 }
 0x613   : > { %v1134_v59 = vsub.f32 %v3792_v12, %v1122_v58  ;;  %2398 = vmatpush3.bf16.msra.mxu1 %v1228_v55 }
 0x614   : > { %v3843_v61 = vpop.eup %2692 }
 0x615   : > { %v1157_v5 = vmul.f32 1.442695, %v1134_v59  ;;  %v1293_v6 = vpop.permute.xlu1 %1292  ;;  %v1183_v7 = vsel %vm1092_vm3, %v3843_v61, 0.0 }
 0x616   : > { %1184 = vadd.xlane.f32.xlu1 %v1183_v7  ;;  %2405 = vmatprep.subr.bf16.mxu0 %v1293_v6  ;;  %v1230_v9 = vpop.permute.xlu0 %1229 }
 0x617   : > { %v3849_v10 = vpop.eup %2694  ;;  %2700 = vpow2.f32 %v1157_v5  ;;  %v1242_v12 = vand.u32 %v3845_v63, %v1230_v9  ;;  %2406 = vmatpush3.bf16.msra.mxu0 %v1293_v6 }
 0x618   : > { %v3852_v13 = vpop.eup %2696  ;;  %v1180_v14 = vsel %vm1085_vm4, %v3849_v10, 0.0  ;;  %2702 = vpow2.f32 %v1153_v3 }
 0x619   : > { %1181 = vadd.xlane.f32.xlu0 %v1180_v14  ;;  %2399 = vmatprep.subr.bf16.mxu1 %v1242_v12  ;;  %v1177_v16 = vsel %vm1085_vm4, %v3852_v13, 0.0 }
 0x61a   : > { %1178 = vadd.xlane.f32.xlu1 %v1177_v16  ;;  %2400 = vmatpush3.bf16.msra.mxu1 %v1242_v12 }
 0x61c   : > { %v3858_v17 = vpop.eup %2698 }
 0x61d   : > { %v1171_v21 = vsel %vm1085_vm4, %v3858_v17, 0.0 }
 0x61e   : > { %1172 = vadd.xlane.f32.xlu1 %v1171_v21 }
 0x621   : > { %v3862_v22 = vpop.eup %2700 }
 0x622   : > { %v1192_v23 = vsel %vm1092_vm3, %v3862_v22, 0.0  ;;  %v3866_v24 = vpop.eup %2702 }
 0x623   : > { %1193 = vadd.xlane.f32.xlu0 %v1192_v23  ;;  %v1186_v25 = vsel %vm1085_vm4, %v3866_v24, 0.0 }
 0x627   : > { %1187 = vadd.xlane.f32.xlu0 %v1186_v25 }
 0x63d   : > { %1418 = vrot.lane.b32.xlu0 %v3746_v19, %s3221_s16  ;;  %v1357_v19 = vpop.permute.xlu0 %1356 }
 0x646   : > { %v1119_v26 = vpop.xlane.xlu1 %1118 }
 0x647   : > { %v1133_v57 = vsub.f32 %v3800_v18, %v1119_v26  ;;  %v1488_v26 = vld [vmem:[#allocation11 + $0x8] sm:$0xf] }
 0x649   : > { %v1155_v60 = vmul.f32 1.442695, %v1133_v57  ;;  %v1612_v57 = vsel %vm1496_vm6, %v1488_v26, 0 }
 0x64a   : > { %v1295_v4 = vpop.permute.xlu1 %1294 }
 0x64b   : > { %2704 = vpow2.f32 %v1155_v60  ;;  %v1304_v20 = vand.u32 %v1295_v4, %v3845_v63  ;;  %v1164_v18 = vpop.xlane.xlu0 %1163  ;;  %v1487_v60 = vld [vmem:[#allocation11 + $0x4] sm:$0xf] }
 0x64d   : > { %2407 = vmatprep.subr.bf16.mxu0 %v1304_v20 }
 0x64e   : > { %2408 = vmatpush3.bf16.msra.mxu0 %v1304_v20  ;;  %v1355_v28 = vpop.permute.xlu1 %1354 }
 0x64f   : > { %2413 = vmatprep.subr.bf16.mxu1 %v1355_v28 }
 0x655   : > { %v3874_v29 = vpop.eup %2704 }
 0x656   : > { %v1189_v31 = vsel %vm1085_vm4, %v3874_v29, 0.0 }
 0x657   : > { %1190 = vadd.xlane.f32.xlu1 %v1189_v31 }
 0x668   : > { %1416 = vrot.lane.b32.xlu1 %v3742_v15, %s3221_s16  ;;  %v1366_v15 = vand.u32 %v1357_v19, %v3845_v63 }
 0x67f   : > { %v1167_v8 = vpop.xlane.xlu1 %1166 }
 0x680   : > { %2706 = vrcp.f32 %v1167_v8 }
 0x681   : > { %2708 = vrcp.f32 %v1164_v18 }
 0x683   : > { %v1161_v11 = vpop.xlane.xlu1 %1160 }
 0x684   : > { %2710 = vrcp.f32 %v1161_v11 }
 0x68a   : > { %v2707_v33 = vpop.eup %2706 }
 0x68b   : > { %v2709_v34 = vpop.eup %2708  ;;  %v1209_v36 = vmul.f32 %v2707_v33, %v3822_v30 }
 0x68c   : > { %v1208_v38 = vmul.f32 %v2709_v34, %v3814_v27 }
 0x68d   : > { %v1220_v40 = vpack.c.bf16 %v1209_v36, %v1209_v36 }
 0x68e   : > { %v2711_v35 = vpop.eup %2710 }
 0x68f   : > { %v1207_v37 = vmul.f32 %v2711_v35, %v3826_v32 }
 0x691   : > { %v1219_v39 = vpack.c.bf16 %v1208_v38, %v1207_v37 }
 0x693   : > { %2401 = vmatprep.mubr.msk.bf16.mxu1 %vm1085_vm4, %v1219_v39 }
 0x694   : > { %2402 = vmatmul.mubr.msk.bf16.vlgmr.msra.gmra.mrb[12].mxu1 %vm1085_vm4, %v1220_v40 }
 0x695   : > { %2414 = vmatpush3.bf16.msra.mxu1 %v1355_v28 }
 0x696   : > { %2415 = vmatprep.subr.bf16.mxu1 %v1366_v15 }
 0x699   : > { %2416 = vmatpush3.bf16.msra.mxu1 %v1366_v15 }
 0x69b   : > { %v1176_v41 = vpop.xlane.xlu0 %1175 }
 0x69f   : > { %v1170_v42 = vpop.xlane.xlu0 %1169 }
 0x6a3   : > { %v1185_v43 = vpop.xlane.xlu1 %1184 }
 0x6a4   : > { %2712 = vrcp.f32 %v1185_v43 }
 0x6a6   : > { %v1182_v30 = vpop.xlane.xlu0 %1181 }
 0x6a7   : > { %2714 = vrcp.f32 %v1182_v30  ;;  %v1179_v32 = vpop.xlane.xlu1 %1178 }
 0x6a8   : > { %2716 = vrcp.f32 %v1179_v32 }
 0x6a9   : > { %2718 = vrcp.f32 %v1176_v41 }
 0x6aa   : > { %2720 = vrcp.f32 %v1170_v42 }
 0x6ab   : > { %v1173_v27 = vpop.xlane.xlu1 %1172 }
 0x6ac   : > { %2722 = vrcp.f32 %v1173_v27 }
 0x6ae   : > { %v2713_v44 = vpop.eup %2712 }
 0x6af   : > { %v1215_v48 = vmul.f32 %v2713_v44, %v3843_v61 }
 0x6b0   : > { %v1194_v5 = vpop.xlane.xlu0 %1193 }
 0x6b1   : > { %v2715_v45 = vpop.eup %2714  ;;  %v1224_v58 = vpack.c.bf16 %v1215_v48, %v1215_v48  ;;  %2724 = vrcp.f32 %v1194_v5 }
 0x6b2   : > { %v2717_v47 = vpop.eup %2716  ;;  %v1214_v49 = vmul.f32 %v2715_v45, %v3849_v10  ;;  %v1486_v10 = vld [vmem:[#allocation11] sm:$0xf] }
 0x6b3   : > { %v2719_v50 = vpop.eup %2718  ;;  %v1213_v51 = vmul.f32 %v2717_v47, %v3852_v13  ;;  %2481 = vmatprep.subr.msk.bf16.mxu1 %vm1496_vm6, %v1486_v10  ;;  %v1498_v12 = vsel %vm1496_vm6, %v1486_v10, 0 }
 0x6b4   : > { %v2721_v53 = vpop.eup %2720  ;;  %v1212_v56 = vmul.f32 %v2719_v50, %v3832_v46  ;;  %v1188_v6 = vpop.xlane.xlu0 %1187 }
 0x6b5   : > { %v1223_v54 = vpack.c.bf16 %v1214_v49, %v1213_v51  ;;  %v1210_v59 = vmul.f32 %v2721_v53, %v3837_v52  ;;  %2726 = vrcp.f32 %v1188_v6 }
 0x6b6   : > { %v2723_v55 = vpop.eup %2722  ;;  %v1222_v3 = vpack.c.bf16 %v1212_v56, %v1212_v56 }
 0x6b7   : > { %2417 = vmatprep.mubr.msk.bf16.mxu1 %vm1085_vm4, %v1223_v54  ;;  %v1211_v62 = vmul.f32 %v2723_v55, %v3858_v17 }
 0x6b8   : > { %2418 = vmatmul.mubr.msk.bf16.vlgmr.msra.gmra.mrb[16].mxu1 %vm1085_vm4, %v1224_v58  ;;  %v1419_v7 = vpop.permute.xlu0 %1418 }
 0x6b9   : > { %v1221_v61 = vpack.c.bf16 %v1211_v62, %v1210_v59  ;;  %v1428_v52 = vand.u32 %v1419_v7, %v3845_v63  ;;  %2430 = vmatpush3.bf16.msra.mxu1 %v1498_v12 }
 0x6ba   : > { %2483 = vmatprep.subr.msk.bf16.mxu1 %vm1496_vm6, %v1488_v26 }
 0x6bb   : > { %2409 = vmatprep.mubr.msk.bf16.mxu0 %vm1085_vm4, %v1221_v61  ;;  %v2725_v13 = vpop.eup %2724 }
 0x6bc   : > { %2410 = vmatmul.mubr.msk.bf16.vlgmr.msra.gmra.mrb[8].mxu0 %vm1085_vm4, %v1222_v3  ;;  %v1218_v17 = vmul.f32 %v2725_v13, %v3862_v22  ;;  %v1555_v22 = vsel %vm1496_vm6, %v1487_v60, 0 }
 0x6be   : > { %v1226_v25 = vpack.c.bf16 %v1218_v17, %v1218_v17 }
 0x6bf   : > { %v2727_v14 = vpop.eup %2726 }
 0x6c0   : > { %v1216_v21 = vmul.f32 %v2727_v14, %v3866_v24  ;;  %v1489_v24 = vld [vmem:[#allocation11 + $0xc] sm:$0xf] }
 0x6c1   : > { %v1669_v4 = vsel %vm1496_vm6, %v1489_v24, 0 }
 0x6e4   : > { %v1191_v46 = vpop.xlane.xlu1 %1190 }
 0x6e5   : > { %2728 = vrcp.f32 %v1191_v46 }
 0x6e8   : > { %v1417_v9 = vpop.permute.xlu1 %1416 }
 0x6e9   : > { %2421 = vmatprep.subr.bf16.mxu0 %v1417_v9 }
 0x6ea   : > { %2422 = vmatpush3.bf16.msra.mxu0 %v1417_v9 }
 0x6eb   : > { %2423 = vmatprep.subr.bf16.mxu0 %v1428_v52 }
 0x6ee   : > { %2424 = vmatpush3.bf16.msra.mxu0 %v1428_v52 }
 0x6ef   : > { %v2729_v16 = vpop.eup %2728  ;;  %2482 = vmatprep.subr.msk.bf16.mxu0 %vm1496_vm6, %v1487_v60 }
 0x6f0   : > { %v1217_v63 = vmul.f32 %v2729_v16, %v3874_v29 }
 0x6f2   : > { %v1225_v23 = vpack.c.bf16 %v1217_v63, %v1216_v21 }
 0x6f4   : > { %2425 = vmatprep.mubr.msk.bf16.mxu0 %vm1085_vm4, %v1225_v23 }
 0x6f5   : > { %2426 = vmatmul.mubr.msk.bf16.vlgmr.msra.gmra.mrb[12].mxu0 %vm1085_vm4, %v1226_v25 }
 0x6f6   : > { %2436 = vmatpush3.bf16.msra.mxu0 %v1555_v22 }
 0x6f7   : > { %2484 = vmatprep.subr.msk.bf16.mxu0 %vm1496_vm6, %v1489_v24 }
 0x767   : > { %v2403_v20 = vpop.f32.mrb[12].mxu1 }
 0x768   : > { %v1278_v28 = vpop.f32.mrb[13].mxu1  ;;  %v1479_v18 = vpack.c.bf16 %v2403_v20, %v2403_v20 }
 0x769   : > { %v2404_v29 = vpop.f32.mrb[14].mxu1 }
 0x76a   : > { %v1281_v31 = vpop.f32.mrb[15].mxu1 }
 0x76b   : > { %v1478_v19 = vpack.c.bf16 %v1281_v31, %v1278_v28 }
 0x76d   : > { %2431 = vmatprep.mubr.msk.bf16.mxu1 %vm826_vm2, %v1478_v19 }
 0x76e   : > { %2432 = vmatmul.mubr.msk.bf16.vlgmr.msra.gmra.mrb[20].mxu1 %vm826_vm2, %v1479_v18 }
 0x76f   : > { %2442 = vmatpush3.bf16.msra.mxu1 %v1612_v57 }
 0x78b   : > { %v2419_v8 = vpop.f32.mrb[16].mxu1 }
 0x78c   : > { %v1402_v11 = vpop.f32.mrb[17].mxu1  ;;  %v1483_v37 = vpack.c.bf16 %v2419_v8, %v2419_v8 }
 0x78d   : > { %v2420_v33 = vpop.f32.mrb[18].mxu1 }
 0x78e   : > { %v1405_v34 = vpop.f32.mrb[19].mxu1 }
 0x78f   : > { %v1482_v35 = vpack.c.bf16 %v1405_v34, %v1402_v11  ;;  %v2411_v36 = vpop.f32.mrb[8].mxu0 }
 0x790   : > { %v1340_v38 = vpop.f32.mrb[9].mxu0  ;;  %v1481_v41 = vpack.c.bf16 %v2411_v36, %v2411_v36 }
 0x791   : > { %v2412_v39 = vpop.f32.mrb[10].mxu0  ;;  %2443 = vmatprep.mubr.msk.bf16.mxu1 %vm826_vm2, %v1482_v35 }
 0x792   : > { %v1343_v40 = vpop.f32.mrb[11].mxu0  ;;  %2444 = vmatmul.mubr.msk.bf16.vlgmr.msra.gmra.mrb[24].mxu1 %vm826_vm2, %v1483_v37 }
 0x793   : > { %v1480_v15 = vpack.c.bf16 %v1343_v40, %v1340_v38 }
 0x795   : > { %2437 = vmatprep.mubr.msk.bf16.mxu0 %vm826_vm2, %v1480_v15 }
 0x796   : > { %2438 = vmatmul.mubr.msk.bf16.vlgmr.msra.gmra.mrb[16].mxu0 %vm826_vm2, %v1481_v41 }
 0x797   : > { %2448 = vmatpush3.bf16.msra.mxu0 %v1669_v4  ;;  %v2281_v4 = vld [vmem:[#allocation13] ss:$0 sm:$0xff] }
 0x7c8   : > { %v2427_v42 = vpop.f32.mrb[12].mxu0 }
 0x7c9   : > { %v1464_v43 = vpop.f32.mrb[13].mxu0  ;;  %v1485_v44 = vpack.c.bf16 %v2427_v42, %v2427_v42 }
 0x7ca   : > { %v2428_v30 = vpop.f32.mrb[14].mxu0 }
 0x7cb   : > { %v1467_v32 = vpop.f32.mrb[15].mxu0 }
 0x7cc   : > { %v1484_v27 = vpack.c.bf16 %v1467_v32, %v1464_v43 }
 0x7ce   : > { %2449 = vmatprep.mubr.msk.bf16.mxu0 %vm826_vm2, %v1484_v27  ;;  %v2670_v27 = vld [vmem:[#allocation17] sm:$0xff]  }
 0x7cf   : > { %2450 = vmatmul.mubr.msk.bf16.vlgmr.msra.gmra.mrb[20].mxu0 %vm826_vm2, %v1485_v44  ;;  %2453 = vmatprep.subr.bf16.mxu1 %v2670_v27  ;;  %v2671_v44 = vld [vmem:[#allocation17 + $0x8] sm:$0xff]  }
 0x7d0   : > { %2454 = vmatpush3.bf16.msra.mxu1 %v2670_v27 }
 0x7d1   : > { %2455 = vmatprep.subr.bf16.mxu1 %v2671_v44 }
 0x7d4   : > { %2456 = vmatpush3.bf16.msra.mxu1 %v2671_v44 }
 0x841   : > { %v2433_v45 = vpop.f32.mrb[20].mxu1 }
 0x842   : > { %v1534_v47 = vpop.f32.mrb[21].mxu1  ;;  %v1733_v56 = vsel %vm630_vm1, %v2433_v45, 0.0 }
 0x843   : > { %v2434_v48 = vpop.f32.mrb[22].mxu1  ;;  %v1719_v62 = vsel %vm623_vm0, %v1534_v47, 0.0 }
 0x844   : > { %v1537_v49 = vpop.f32.mrb[23].mxu1 }
 0x845   : > { %v1726_v9 = vsel %vm623_vm0, %v1537_v49, 0.0 }
 0x865   : > { %v2445_v50 = vpop.f32.mrb[24].mxu1 }
 0x866   : > { %v1648_v51 = vpop.f32.mrb[25].mxu1  ;;  %v1736_v6 = vsel %vm630_vm1, %v2445_v50, 0.0 }
 0x867   : > { %v2446_v53 = vpop.f32.mrb[26].mxu1  ;;  %v1722_v52 = vsel %vm623_vm0, %v1648_v51, 0.0 }
 0x868   : > { %v1651_v54 = vpop.f32.mrb[27].mxu1 }
 0x869   : > { %v2439_v55 = vpop.f32.mrb[16].mxu0  ;;  %v1729_v16 = vsel %vm623_vm0, %v1651_v54, 0.0 }
 0x86a   : > { %v1734_v58 = vsel %vm630_vm1, %v2439_v55, 0.0  ;;  %v1591_v59 = vpop.f32.mrb[17].mxu0 }
 0x86b   : > { %v1735_v61 = vadd.f32 %v1734_v58, %v1733_v56  ;;  %v1720_v3 = vsel %vm623_vm0, %v1591_v59, 0.0  ;;  %v2440_v5 = vpop.f32.mrb[18].mxu0  ;;  %v2282_v58 = vld [vmem:[#allocation14] ss:$0 sm:$0xff] }
 0x86c   : > { %v1721_v46 = vadd.f32 %v1720_v3, %v1719_v62  ;;  %v1594_v7 = vpop.f32.mrb[19].mxu0  ;;  %v2283_v5 = vld [vmem:[#allocation16] ss:$0 sm:$0xff] }
 0x86d   : > { %v1727_v10 = vsel %vm623_vm0, %v1594_v7, 0.0  ;;  %v1737_v12 = vadd.f32 %v1736_v6, %v1735_v61 }
 0x86e   : > { %v1728_v13 = vadd.f32 %v1727_v10, %v1726_v9  ;;  %v1723_v14 = vadd.f32 %v1722_v52, %v1721_v46 }
 0x870   : > { %v1730_v17 = vadd.f32 %v1729_v16, %v1728_v13  ;;  %v2672_v16 = vld [vmem:[#allocation20] sm:$0xff]  }
 0x871   : > { %2461 = vmatprep.subr.bf16.mxu0 %v2672_v16 }
 0x872   : > { %2462 = vmatpush3.bf16.msra.mxu0 %v2672_v16 }
 0x8a2   : > { %v2451_v21 = vpop.f32.mrb[20].mxu0 }
 0x8a3   : > { %v1738_v63 = vsel %vm630_vm1, %v2451_v21, 0.0  ;;  %v1705_v23 = vpop.f32.mrb[21].mxu0  ;;  %v2674_v21 = vld [vmem:[#allocation20 + $0x10] sm:$0xff]  }
 0x8a4   : > { %v1739_v25 = vadd.f32 %v1738_v63, %v1737_v12  ;;  %v1724_v26 = vsel %vm623_vm0, %v1705_v23, 0.0  ;;  %v2452_v57 = vpop.f32.mrb[22].mxu0  ;;  %v2675_v63 = vld [vmem:[#allocation20 + $0x18] sm:$0xff]  }
 0x8a5   : > { %v1725_v60 = vadd.f32 %v1724_v26, %v1723_v14  ;;  %v1708_v22 = vpop.f32.mrb[23].mxu0  ;;  %v2284_v23 = vld [vmem:[#allocation19] ss:$0 sm:$0xff] }
 0x8a6   : > { %v1731_v24 = vsel %vm623_vm0, %v1708_v22, 0.0  ;;  %v1742_v29 = vadd.f32 %v1739_v25, %v3702_v1 }
 0x8a7   : > { %v1740_v20 = vadd.f32 %v1725_v60, %v3700_v0  ;;  %v1732_v28 = vadd.f32 %v1731_v24, %v1730_v17  ;;  %v2673_v17 = vld [vmem:[#allocation20 + $0x8] sm:$0xff]  }
 0x8a8   : > { %v3941_v33 = vadd.f32 %v2281_v4, %v1742_v29  ;;  %2463 = vmatprep.subr.bf16.mxu0 %v2673_v17 }
 0x8a9   : > { %v1741_v31 = vadd.f32 %v1732_v28, %v3704_v2  ;;  %v3933_v19 = vadd.f32 %v2281_v4, %v1740_v20  ;;  %2464 = vmatpush3.bf16.msra.mxu0 %v2673_v17 }
 0x8aa   : > { %v1761_v0 = vsel %vm630_vm1, %v3941_v33, 0.0  ;;  %2465 = vmatprep.subr.bf16.mxu0 %v2674_v21 }
 0x8ab   : > { %v1755_v18 = vsel %vm623_vm0, %v3933_v19, 0.0  ;;  %v3937_v8 = vadd.f32 %v2281_v4, %v1741_v31 }
 0x8ac   : > { %1756 = vadd.xlane.f32.xlu1 %v1755_v18 }
 0x8ad   : > { %v1758_v11 = vsel %vm623_vm0, %v3937_v8, 0.0  ;;  %2466 = vmatpush3.bf16.msra.mxu0 %v2674_v21 }
 0x8ae   : > { %1759 = vadd.xlane.f32.xlu0 %v1758_v11  ;;  %2467 = vmatprep.subr.bf16.mxu0 %v2675_v63 }
 0x8b1   : > { %2468 = vmatpush3.bf16.msra.mxu0 %v2675_v63 }
 0x8b2   : > { %1762 = vadd.xlane.f32.xlu0 %v1761_v0 }
 0x939   : > { %v1757_v1 = vpop.xlane.xlu1 %1756 }
 0x93a   : > { %v1764_v2 = vmul.f32 0.03125, %v1757_v1 }
 0x93b   : > { %v1760_v34 = vpop.xlane.xlu0 %1759 }
 0x93c   : > { %v1767_v35 = vsub.f32 %v3933_v19, %v1764_v2  ;;  %v1765_v36 = vmul.f32 0.03125, %v1760_v34 }
 0x93e   : > { %v1768_v37 = vsub.f32 %v3937_v8, %v1765_v36  ;;  %v1770_v38 = vmul.f32 %v1767_v35, %v1767_v35 }
 0x93f   : > { %v1763_v39 = vpop.xlane.xlu0 %1762 }
 0x940   : > { %v1766_v40 = vmul.f32 0.03125, %v1763_v39  ;;  %v1773_v15 = vsel %vm623_vm0, %v1770_v38, 0.0  ;;  %v1771_v41 = vmul.f32 %v1768_v37, %v1768_v37 }
 0x941   : > { %1774 = vadd.xlane.f32.xlu0 %v1773_v15 }
 0x942   : > { %v1769_v42 = vsub.f32 %v3941_v33, %v1766_v40  ;;  %v1776_v43 = vsel %vm623_vm0, %v1771_v41, 0.0 }
 0x943   : > { %1777 = vadd.xlane.f32.xlu1 %v1776_v43 }
 0x944   : > { %v1772_v30 = vmul.f32 %v1769_v42, %v1769_v42 }
 0x946   : > { %v1779_v32 = vsel %vm630_vm1, %v1772_v30, 0.0 }
 0x947   : > { %1780 = vadd.xlane.f32.xlu0 %v1779_v32 }
 0x9ce   : > { %v1775_v45 = vpop.xlane.xlu0 %1774 }
 0x9cf   : > { %v1782_v47 = vmul.f32 0.03125, %v1775_v45 }
 0x9d0   : > { %v1778_v48 = vpop.xlane.xlu1 %1777 }
 0x9d1   : > { %v1785_v49 = vadd.f32 1e-05, %v1782_v47  ;;  %v1783_v50 = vmul.f32 0.03125, %v1778_v48 }
 0x9d3   : > { %2730 = vrsqrt.f32 %v1785_v49  ;;  %v1786_v51 = vadd.f32 1e-05, %v1783_v50 }
 0x9d4   : > { %v1781_v53 = vpop.xlane.xlu0 %1780 }
 0x9d5   : > { %2732 = vrsqrt.f32 %v1786_v51  ;;  %v1784_v54 = vmul.f32 0.03125, %v1781_v53  ;;  %v2289_v51 = vld [vmem:[#allocation22] ss:$0 sm:$0xff] }
 0x9d7   : > { %v1787_v55 = vadd.f32 1e-05, %v1784_v54 }
 0x9d9   : > { %2734 = vrsqrt.f32 %v1787_v55 }
 0x9dd   : > { %v2731_v56 = vpop.eup %2730 }
 0x9de   : > { %v1791_v59 = vmul.f32 %v2731_v56, %v1767_v35 }
 0x9df   : > { %v2733_v62 = vpop.eup %2732 }
 0x9e0   : > { %v1792_v61 = vmul.f32 %v2733_v62, %v1768_v37  ;;  %v1800_v3 = vmul.f32 %v2282_v58, %v1791_v59 }
 0x9e2   : > { %v1801_v6 = vmul.f32 %v2282_v58, %v1792_v61  ;;  %v1809_v9 = vadd.f32 %v2283_v5, %v1800_v3 }
 0x9e3   : > { %v2735_v46 = vpop.eup %2734 }
 0x9e4   : > { %v1793_v7 = vmul.f32 %v2735_v46, %v1769_v42  ;;  %v1810_v52 = vadd.f32 %v2283_v5, %v1801_v6 }
 0x9e6   : > { %v1802_v10 = vmul.f32 %v2282_v58, %v1793_v7  ;;  %v1812_v12 = vpack.c.bf16 %v1810_v52, %v1809_v9 }
 0x9e8   : > { %2457 = vmatprep.mubr.msk.bf16.mxu1 %vm623_vm0, %v1812_v12  ;;  %v1811_v13 = vadd.f32 %v2283_v5, %v1802_v10 }
 0x9ea   : > { %v1813_v14 = vpack.c.bf16 %v1811_v13, %v1811_v13 }
 0x9ec   : > { %2458 = vmatmul.mubr.msk.bf16.vlgmr.msra.gmra.mrb[28].mxu1 %vm623_vm0, %v1813_v14 }
 0xabf   : > { %v2459_v25 = vpop.f32.mrb[28].mxu1 }
 0xac0   : > { %v1886_v26 = vadd.f32 %v2459_v25, %v2284_v23  ;;  %v1877_v57 = vpop.f32.mrb[29].mxu1 }
 0xac1   : > { %v1878_v60 = vadd.f32 %v2284_v23, %v1877_v57  ;;  %v2460_v22 = vpop.f32.mrb[30].mxu1 }
 0xac2   : > { %v1896_v24 = vmul.f32 0.044715, %v1886_v26  ;;  %v1880_v4 = vpop.f32.mrb[31].mxu1  ;;  %v1893_v30 = vmul.f32 0.5, %v1886_v26 }
 0xac3   : > { %v1894_v20 = vmul.f32 0.044715, %v1878_v60  ;;  %v1881_v28 = vadd.f32 %v2284_v23, %v1880_v4  ;;  %v1891_v32 = vmul.f32 0.5, %v1878_v60 }
 0xac4   : > { %v1899_v29 = vmul.f32 %v1896_v24, %v1886_v26 }
 0xac5   : > { %v1897_v31 = vmul.f32 %v1894_v20, %v1878_v60  ;;  %v1895_v18 = vmul.f32 0.044715, %v1881_v28  ;;  %v1892_v27 = vmul.f32 0.5, %v1881_v28 }
 0xac6   : > { %v1902_v11 = vmul.f32 %v1899_v29, %v1886_v26 }
 0xac7   : > { %v1900_v0 = vmul.f32 %v1897_v31, %v1878_v60  ;;  %v1898_v1 = vmul.f32 %v1895_v18, %v1881_v28 }
 0xac8   : > { %v1905_v2 = vadd.f32 %v1902_v11, %v1886_v26 }
 0xac9   : > { %v1903_v34 = vadd.f32 %v1900_v0, %v1878_v60  ;;  %v1901_v35 = vmul.f32 %v1898_v1, %v1881_v28 }
 0xaca   : > { %v1908_v36 = vmul.f32 0.7978846, %v1905_v2 }
 0xacb   : > { %v1906_v37 = vmul.f32 0.7978846, %v1903_v34  ;;  %v1904_v38 = vadd.f32 %v1901_v35, %v1881_v28 }
 0xacc   : > { %2736 = vtanh.f32 %v1908_v36 }
 0xacd   : > { %2738 = vtanh.f32 %v1906_v37  ;;  %v1907_v39 = vmul.f32 0.7978846, %v1904_v38 }
 0xacf   : > { %2740 = vtanh.f32 %v1907_v39 }
 0xad6   : > { %v2737_v40 = vpop.eup %2736 }
 0xad7   : > { %v2739_v15 = vpop.eup %2738  ;;  %v1914_v41 = vadd.f32 1.0, %v2737_v40 }
 0xad8   : > { %v1912_v42 = vadd.f32 1.0, %v2739_v15 }
 0xad9   : > { %v2741_v43 = vpop.eup %2740  ;;  %v1917_v45 = vmul.f32 %v1914_v41, %v1893_v30 }
 0xada   : > { %v1913_v44 = vadd.f32 1.0, %v2741_v43  ;;  %v1915_v47 = vmul.f32 %v1912_v42, %v1891_v32 }
 0xadb   : > { %v1919_v50 = vpack.c.bf16 %v1917_v45, %v1917_v45 }
 0xadc   : > { %v1916_v48 = vmul.f32 %v1913_v44, %v1892_v27 }
 0xade   : > { %v1918_v49 = vpack.c.bf16 %v1916_v48, %v1915_v47 }
 0xae0   : > { %2469 = vmatprep.mubr.msk.bf16.mxu0 %vm1959_vm7, %v1918_v49 }
 0xae1   : > { %2470 = vmatmul.mubr.msk.bf16.vlgmr.msra.gmra.mrb[24].mxu0 %vm1959_vm7, %v1919_v50 }
 0xbb4   : > { %v2471_v53 = vpop.f32.mrb[24].mxu0 }
 0xbb5   : > { %v2009_v54 = vadd.f32 %v2471_v53, %v2289_v51  ;;  %v2000_v55 = vpop.f32.mrb[25].mxu0 }
 0xbb6   : > { %v2001_v56 = vadd.f32 %v2289_v51, %v2000_v55  ;;  %v2472_v58 = vpop.f32.mrb[26].mxu0 }
 0xbb7   : > { %v2016_v59 = vadd.f32 %v2009_v54, %v3941_v33  ;;  %v2003_v62 = vpop.f32.mrb[27].mxu0 }
 0xbb8   : > { %v2014_v61 = vadd.f32 %v2001_v56, %v3933_v19  ;;  %v2004_v3 = vadd.f32 %v2289_v51, %v2003_v62 }
 0xbb9   : > { %2019 = vst.msk [vmem:[%s616_s2 + $0x10] sm:$0x1] %vm630_vm1, %v2016_v59 }
 0xbba   : > { %2017 = vst.msk [vmem:[%s616_s2] sm:$0xff] %vm623_vm0, %v2014_v61  ;;  %v2015_v5 = vadd.f32 %v2004_v3, %v3937_v8 }
 0xbbc   : > { %2018 = vst.msk [vmem:[%s616_s2 + $0x8] sm:$0xff] %vm623_vm0, %v2015_v5 }
 0xbbd   : > { %3121 = shalt.err (!%p3118_p7)
}
 0xbbe   : > { %s3122_s16 = scalar_lea.hbm %s3966_s21, 384  ;;  %s3126_s22 = scalar_lea.hbm %s4071_s24, 768 }
 0xbbf   : > { %p3123_p5 = scmp.ne.s32.totalorder %s3966_s21, %s3122_s16  ;;  %p3127_p13 = scmp.lt.u32.totalorder %s3966_s21, %s4071_s24 }
 0xbc0   : > { %p3128_p1 = scmp.lt.u32.totalorder %s3126_s22, %s3122_s16  ;;  %p3130_p2 = scmp.lt.u32.totalorder %s3122_s16, %s3966_s21 }
 0xbc1   : > { %p3124_p9 = pnand %p3123_p5, %p4072_p8 }
 0xbc2   : > { %p3129_p3 = por %p3128_p1, %p3127_p13 }
 0xbc3   : > { %p3125_p4 = pneg %p3124_p9 }
 0xbc4   : > { %p3131_p10 = por %p3130_p2, %p3129_p3 }
 0xbc6   : > { %p3132_p11 = pnand %p3131_p10, %p3125_p4 }
 0xbc8   : > { %3135 = shalt.err (!%p3132_p11)
}
 0xbc9   : > { %s3224_s0 = smov 128   ;;  %s3225_s20 = smov 8  }
 0xbca   : > { %2539 = dma.vmem_to_hbm [thread:$0]  (%p4072_p8), %s3957_s4, 384, %s3966_s21, %s2021_s30, %s3224_s0, %s3224_s0, %s3225_s20  }
 0xbcb PF: > { %s2049_s14 = sand.u32 1, %s3186_s25   ;;  %p4073_p12 = scmp.ne.s32.totalorder %s4053_s3, 0 }
 0xbcc   : > { %p4074_p0 = scmp.ge.s32.totalorder %s3198_s28, 2  ;;  %s2050_s16 = scalar_lea.sflag [#allocation4], %s2049_s14 }
 0xbce   : > { %p2583_p6 = pnand %p4074_p0, %p4073_p12 }
 0xbd0   : > { %3181 = dma.done.wait (!%p2583_p6), %s2050_s16, 384  }
 0xbd1   : > { %3183 = vsyncadd (!%p2583_p6), %s2050_s16, 4294966912  ;;  %p32_p7 = scmp.ge.s32.totalorder %s3593_s18, 4   ;;  %s4075_s25 = smov %s3190_s26 }
 0xbd2   : > { %s4076_s26 = smov %s3194_s27  ;;  %s4077_s27 = smov %s3604_s29 }
 0xbd3   : > { %s4078_s28 = smov %s3593_s18  ;;  %34 = sbr.rel (!%p32_p7) target bundleno = 18 (0x12), region = 165 }
 0xbda   :  { %2055 = vsyncpa [#allocation3], 1 }
 0xbdb   :  { %2057 = vsyncpa [#allocation3 + $0x1], 1 }
 0xbdc   :  { %2058 = vsyncpa [#allocation6], 1 }
 0xbdd   :  { %2059 = vsyncpa [#allocation9], 1 }
 0xbde   :  { %2060 = vsyncpa [#allocation12], 1 }
 0xbdf   :  { %2061 = vsyncpa [#allocation15], 1 }
 0xbe0   :  { %2062 = vsyncpa [#allocation18], 1 }
 0xbe1   :  { %2063 = vsyncpa [#allocation21], 1 }
 0xbe2   :  { %2064 = vsyncpa [#allocation4], 1 }
 0xbe3   :  { %2066 = vsyncpa [#allocation4 + $0x1], 1 }

</bundles_post_ra>
